<compile_context>
chip_gen: v7x
topology: tpu7x:2x2x1
jax: 0.10.0
libtpu: 0.0.40
codegen_flags: <defaults>
</compile_context>

<pallas_src>
import functools
import math

import jax
import jax.numpy as jnp
from jax import lax
from jax.experimental import pallas as pl
from jax.experimental.pallas import tpu as pltpu


def _round_up(x, m):
    return ((x + m - 1) // m) * m


def _cross_attn_kernel(skv,                      # true (unpadded) KV length, static
                       x_ref, y_ref,
                       wq_ref, bq_ref,
                       wk_ref, bk_ref,
                       wv_ref, bv_ref,
                       wo_ref, bo_ref,
                       o_ref,
                       k_scr, v_scr, wq_scr, wo_scr, acc_ref):
    """Grid = (batch, query_block, head). One step = one head of one q-block."""
    qi = pl.program_id(1)
    h = pl.program_id(2)
    n_heads = pl.num_programs(2)

    # --- Once per (batch, head): cache weights and K/V projections in VMEM.
    @pl.when(qi == 0)
    def _():
        # Q / O projection weights for this head stay resident for the rest
        # of this batch element's query blocks (weight DMAs stop after qi==0).
        wq_scr[h] = wq_ref[0]
        wo_scr[h] = wo_ref[0]
        # K / V projection for this head.
        y = y_ref[0]                                              # (Skv_p, Dc) bf16
        k = jnp.dot(y, wk_ref[0], preferred_element_type=jnp.float32) + bk_ref[0]
        v = jnp.dot(y, wv_ref[0], preferred_element_type=jnp.float32) + bv_ref[0]
        k_scr[h] = k.astype(k_scr.dtype)
        v_scr[h] = v.astype(v_scr.dtype)

    # --- Zero the output-projection accumulator at the start of the head sweep.
    @pl.when(h == 0)
    def _():
        acc_ref[...] = jnp.zeros_like(acc_ref)

    # --- Q projection for this head (1/sqrt(d_head) already folded into wq/bq).
    q = jnp.dot(x_ref[0], wq_scr[h], preferred_element_type=jnp.float32) + bq_ref[0]
    q = q.astype(jnp.bfloat16)                                    # (TQ, E)

    kh = k_scr[h]                                                 # (Skv_p, E) bf16
    vh = v_scr[h]

    # --- scores = q @ k^T (contract the padded head dim), f32 accumulate.
    s = lax.dot_general(q, kh, (((1,), (1,)), ((), ())),
                        preferred_element_type=jnp.float32)       # (TQ, Skv_p)
    skv_p = s.shape[-1]
    if skv < skv_p:                       # static: mask padded key positions
        col = lax.broadcasted_iota(jnp.int32, s.shape, 1)
        s = jnp.where(col < skv, s, -1e30)

    # --- softmax in f32; denominator reciprocal on the EUP.
    s = s - jnp.max(s, axis=-1, keepdims=True)
    p = jnp.exp(s)
    p = p * pl.reciprocal(jnp.sum(p, axis=-1, keepdims=True), approx=True)

    # --- attention output for this head, then its slice of the out-projection.
    attn = jnp.dot(p.astype(jnp.bfloat16), vh,
                   preferred_element_type=jnp.float32)            # (TQ, E)
    acc_ref[...] += jnp.dot(attn.astype(jnp.bfloat16), wo_scr[h],
                            preferred_element_type=jnp.float32)   # (TQ, D)

    # --- Last head: add output bias and do one full lane-dense store.
    @pl.when(h == n_heads - 1)
    def _():
        o_ref[0] = (acc_ref[...] + bo_ref[...]).astype(o_ref.dtype)


def cross_attention(x, y, params, n_heads, *, q_block=512):
    """x: (B, Sq, d_embed), y: (B, Skv, d_cross).
    params in PyTorch Linear layout: w* (out, in), b* (out,).
    Returns (B, Sq, d_embed)."""
    B, Sq, D = x.shape
    _, Skv, Dc = y.shape
    d_head = D // n_heads

    # Lane-dense padding of head dim and KV length; query tiling.
    E = _round_up(d_head, 128)
    Skv_p = _round_up(Skv, 128)
    TQ = min(q_block, _round_up(Sq, 8))
    Sq_p = _round_up(Sq, TQ)
    n_q = Sq_p // TQ

    f32, bf16 = jnp.float32, jnp.bfloat16
    scale = 1.0 / math.sqrt(d_head)

    def head_w(w, in_dim, s=1.0):
        # torch Linear (out, in) -> head-major (H, in, E), zero-padded, bf16
        wt = (w.astype(f32) * s).T.reshape(in_dim, n_heads, d_head)
        wt = jnp.pad(wt, ((0, 0), (0, 0), (0, E - d_head)))
        return jnp.transpose(wt, (1, 0, 2)).astype(bf16)

    def head_b(b, s=1.0):
        bb = (b.astype(f32) * s).reshape(n_heads, 1, d_head)
        return jnp.pad(bb, ((0, 0), (0, 0), (0, E - d_head)))     # f32

    wq_h = head_w(params["wq"], D, scale)            # (H, D,  E)  scale folded
    wk_h = head_w(params["wk"], Dc)                  # (H, Dc, E)
    wv_h = head_w(params["wv"], Dc)                  # (H, Dc, E)
    bq_h = head_b(params["bq"], scale)               # (H, 1, E) f32
    bk_h = head_b(params["bk"])
    bv_h = head_b(params["bv"])
    # Wo: (out=D, in=D) -> (in, out) -> (H, d_head, D) -> pad rows -> (H, E, D)
    wo_h = params["wo"].astype(f32).T.reshape(n_heads, d_head, D)
    wo_h = jnp.pad(wo_h, ((0, 0), (0, E - d_head), (0, 0))).astype(bf16)
    bo = params["bo"].astype(f32).reshape(1, D)

    # bf16 activations for the MXU / halved HBM->VMEM traffic.
    x_p = jnp.pad(x, ((0, 0), (0, Sq_p - Sq), (0, 0))).astype(bf16)
    y_p = jnp.pad(y, ((0, 0), (0, Skv_p - Skv), (0, 0))).astype(bf16)

    kernel = functools.partial(_cross_attn_kernel, Skv)

    stick = n_heads - 1
    # Per-head biases for Q are read every step (tiny -> just stream them).
    bq_idx = lambda b, qi, h: (h, 0, 0)
    # Weights are consumed only on the first query block of each batch element
    # (they are cached in VMEM scratch) -> go "sticky" afterwards so the
    # pipeline stops issuing weight DMAs.
    w_once = lambda b, qi, h: (jnp.where(qi == 0, h, stick), 0, 0)

    out = pl.pallas_call(
        kernel,
        out_shape=jax.ShapeDtypeStruct((B, Sq_p, D), x.dtype),
        grid_spec=pltpu.PrefetchScalarGridSpec(
            num_scalar_prefetch=0,
            grid=(B, n_q, n_heads),
            in_specs=[
                pl.BlockSpec((1, TQ, D), lambda b, qi, h: (b, qi, 0)),     # x
                pl.BlockSpec((1, Skv_p, Dc), lambda b, qi, h: (b, 0, 0)),  # y
                pl.BlockSpec((1, D, E), w_once),                           # Wq[h]
                pl.BlockSpec((1, 1, E), bq_idx),                           # bq[h]
                pl.BlockSpec((1, Dc, E), w_once),                          # Wk[h]
                pl.BlockSpec((1, 1, E), w_once),                           # bk[h]
                pl.BlockSpec((1, Dc, E), w_once),                          # Wv[h]
                pl.BlockSpec((1, 1, E), w_once),                           # bv[h]
                pl.BlockSpec((1, E, D), w_once),                           # Wo[h]
                pl.BlockSpec((1, D), lambda b, qi, h: (0, 0)),             # bo
            ],
            out_specs=pl.BlockSpec((1, TQ, D), lambda b, qi, h: (b, qi, 0)),
            scratch_shapes=[
                pltpu.VMEM((n_heads, Skv_p, E), bf16),   # K cache (per head)
                pltpu.VMEM((n_heads, Skv_p, E), bf16),   # V cache (per head)
                pltpu.VMEM((n_heads, D, E), bf16),       # Wq cache (per head)
                pltpu.VMEM((n_heads, E, D), bf16),       # Wo cache (per head)
                pltpu.VMEM((TQ, D), f32),                # out-proj accumulator
            ],
        ),
        compiler_params=pltpu.CompilerParams(
            # q-block axis carries the K/V + weight caches and the head axis
            # carries the out-projection accumulator, so only batch is
            # megacore-parallel.
            dimension_semantics=("parallel", "arbitrary", "arbitrary"),
            vmem_limit_bytes=64 * 1024 * 1024,
        ),
    )(x_p, y_p, wq_h, bq_h, wk_h, bk_h, wv_h, bv_h, wo_h, bo)

    return out[:, :Sq, :]


def _init_linear(key, in_f, out_f):
    """Deterministic init mimicking torch.nn.Linear default (uniform +-1/sqrt(in))."""
    kw, kb = jax.random.split(key)
    bound = 1.0 / math.sqrt(in_f)
    w = jax.random.uniform(kw, (out_f, in_f), jnp.float32, -bound, bound)
    b = jax.random.uniform(kb, (out_f,), jnp.float32, -bound, bound)
    return w, b


def _reference(x, y, params, n_heads):
    """Pure-JAX f32 reference matching the PyTorch forward."""
    B, Sq, D = x.shape
    d_head = D // n_heads
    q = x @ params["wq"].T + params["bq"]
    k = y @ params["wk"].T + params["bk"]
    v = y @ params["wv"].T + params["bv"]
    q = q.reshape(B, -1, n_heads, d_head).transpose(0, 2, 1, 3)
    k = k.reshape(B, -1, n_heads, d_head).transpose(0, 2, 1, 3)
    v = v.reshape(B, -1, n_heads, d_head).transpose(0, 2, 1, 3)
    w = jnp.einsum("bhqd,bhkd->bhqk", q, k) / math.sqrt(d_head)
    w = jax.nn.softmax(w, axis=-1)
    o = jnp.einsum("bhqk,bhkd->bhqd", w, v)
    o = o.transpose(0, 2, 1, 3).reshape(B, Sq, D)
    return o @ params["wo"].T + params["bo"]


if __name__ == "__main__":
    B, Sq, Skv = 2, 16, 8
    d_embed, d_cross, n_heads = 32, 24, 4

    root = jax.random.PRNGKey(0)
    kx, ky, kq, kk, kv, ko = jax.random.split(root, 6)

    x = jax.random.normal(kx, (B, Sq, d_embed), jnp.float32)
    y = jax.random.normal(ky, (B, Skv, d_cross), jnp.float32)

    wq, bq = _init_linear(kq, d_embed, d_embed)
    wk, bk = _init_linear(kk, d_cross, d_embed)
    wv, bv = _init_linear(kv, d_cross, d_embed)
    wo, bo = _init_linear(ko, d_embed, d_embed)
    params = dict(wq=wq, bq=bq, wk=wk, bk=bk, wv=wv, bv=bv, wo=wo, bo=bo)

    out = cross_attention(x, y, params, n_heads)
    out = jax.block_until_ready(out)

    ref = _reference(x, y, params, n_heads)
    assert out.shape == (B, Sq, d_embed)
    err = jnp.max(jnp.abs(out - ref))
    # bf16 MXU operands with f32 accumulation -> bf16-level tolerance.
    assert jnp.allclose(out, ref, atol=2e-2, rtol=2e-2), f"max abs err {err}"

    print("KERNEL_OK")
</pallas_src>

<mosaic_0001>
module attributes {stable_mosaic.version = 11 : i64} {
  func.func @_cross_attn_kernel(%arg0: i32, %arg1: i32, %arg2: i32, %arg3: memref<1x16x32xbf16, #tpu.memory_space<vmem>>, %arg4: memref<1x128x24xbf16, #tpu.memory_space<vmem>>, %arg5: memref<1x32x128xbf16, #tpu.memory_space<vmem>>, %arg6: memref<1x1x128xf32, #tpu.memory_space<vmem>>, %arg7: memref<1x24x128xbf16, #tpu.memory_space<vmem>>, %arg8: memref<1x1x128xf32, #tpu.memory_space<vmem>>, %arg9: memref<1x24x128xbf16, #tpu.memory_space<vmem>>, %arg10: memref<1x1x128xf32, #tpu.memory_space<vmem>>, %arg11: memref<1x128x32xbf16, #tpu.memory_space<vmem>>, %arg12: memref<1x32xf32, #tpu.memory_space<vmem>>, %arg13: memref<1x16x32xf32, #tpu.memory_space<vmem>>, %arg14: memref<4x128x128xbf16, #tpu.memory_space<vmem>>, %arg15: memref<4x128x128xbf16, #tpu.memory_space<vmem>>, %arg16: memref<4x32x128xbf16, #tpu.memory_space<vmem>>, %arg17: memref<4x128x32xbf16, #tpu.memory_space<vmem>>, %arg18: memref<16x32xf32, #tpu.memory_space<vmem>>) attributes {dimension_semantics = [#tpu.dimension_semantics<parallel>, #tpu.dimension_semantics<arbitrary>, #tpu.dimension_semantics<arbitrary>], iteration_bounds = array<i64: 2, 1, 4>, scalar_prefetch = 0 : i64, scratch_operands = 5 : i64, tpu.core_type = #tpu.core_type<tc>, window_params = [{transform_indices = @transform_0, window_bounds = array<i64: 1, 16, 32>}, {transform_indices = @transform_1, window_bounds = array<i64: 1, 128, 24>}, {transform_indices = @transform_2, window_bounds = array<i64: 1, 32, 128>}, {transform_indices = @transform_3, window_bounds = array<i64: 1, 1, 128>}, {transform_indices = @transform_4, window_bounds = array<i64: 1, 24, 128>}, {transform_indices = @transform_5, window_bounds = array<i64: 1, 1, 128>}, {transform_indices = @transform_6, window_bounds = array<i64: 1, 24, 128>}, {transform_indices = @transform_7, window_bounds = array<i64: 1, 1, 128>}, {transform_indices = @transform_8, window_bounds = array<i64: 1, 128, 32>}, {pipeline_mode = #tpu.pipeline_mode<synchronous>, transform_indices = @transform_9, window_bounds = array<i64: 1, 32>}, {transform_indices = @transform_10, window_bounds = array<i64: 1, 16, 32>}]} {
    %c0_i32 = arith.constant 0 : i32
    %0 = arith.cmpi eq, %arg1, %c0_i32 : i32
    %1 = arith.extui %0 : i1 to i32
    %c0_i32_0 = arith.constant 0 : i32
    %2 = arith.cmpi ne, %1, %c0_i32_0 : i32
    scf.if %2 {
      %c0_27 = arith.constant 0 : index
      %c0_28 = arith.constant 0 : index
      %c0_29 = arith.constant 0 : index
      %52 = vector.load %arg5[%c0_27, %c0_28, %c0_29] : memref<1x32x128xbf16, #tpu.memory_space<vmem>>, vector<1x32x128xbf16>
      %53 = vector.shape_cast %52 : vector<1x32x128xbf16> to vector<32x128xbf16>
      %54 = arith.index_cast %arg2 : i32 to index
      %c0_30 = arith.constant 0 : index
      %c0_31 = arith.constant 0 : index
      %55 = vector.load %arg16[%54, %c0_30, %c0_31] : memref<4x32x128xbf16, #tpu.memory_space<vmem>>, vector<1x32x128xbf16>
      %56 = vector.shape_cast %55 : vector<1x32x128xbf16> to vector<32x128xbf16>
      %57 = vector.shape_cast %53 : vector<32x128xbf16> to vector<1x32x128xbf16>
      tpu.vector_store %arg16[%54, %c0_30, %c0_31], %57 {strides = array<i32>} : memref<4x32x128xbf16, #tpu.memory_space<vmem>>, vector<1x32x128xbf16>,
      %c0_32 = arith.constant 0 : index
      %c0_33 = arith.constant 0 : index
      %c0_34 = arith.constant 0 : index
      %58 = vector.load %arg11[%c0_32, %c0_33, %c0_34] : memref<1x128x32xbf16, #tpu.memory_space<vmem>>, vector<1x128x32xbf16>
      %59 = vector.shape_cast %58 : vector<1x128x32xbf16> to vector<128x32xbf16>
      %60 = arith.index_cast %arg2 : i32 to index
      %c0_35 = arith.constant 0 : index
      %c0_36 = arith.constant 0 : index
      %61 = vector.load %arg17[%60, %c0_35, %c0_36] : memref<4x128x32xbf16, #tpu.memory_space<vmem>>, vector<1x128x32xbf16>
      %62 = vector.shape_cast %61 : vector<1x128x32xbf16> to vector<128x32xbf16>
      %63 = vector.shape_cast %59 : vector<128x32xbf16> to vector<1x128x32xbf16>
      tpu.vector_store %arg17[%60, %c0_35, %c0_36], %63 {strides = array<i32>} : memref<4x128x32xbf16, #tpu.memory_space<vmem>>, vector<1x128x32xbf16>,
      %c0_37 = arith.constant 0 : index
      %c0_38 = arith.constant 0 : index
      %c0_39 = arith.constant 0 : index
      %64 = vector.load %arg4[%c0_37, %c0_38, %c0_39] : memref<1x128x24xbf16, #tpu.memory_space<vmem>>, vector<1x128x24xbf16>
      %65 = vector.shape_cast %64 : vector<1x128x24xbf16> to vector<128x24xbf16>
      %c0_40 = arith.constant 0 : index
      %c0_41 = arith.constant 0 : index
      %c0_42 = arith.constant 0 : index
      %66 = vector.load %arg7[%c0_40, %c0_41, %c0_42] : memref<1x24x128xbf16, #tpu.memory_space<vmem>>, vector<1x24x128xbf16>
      %67 = vector.shape_cast %66 : vector<1x24x128xbf16> to vector<24x128xbf16>
      %cst_43 = arith.constant dense<0.000000e+00> : vector<128x128xf32>
      %68 = tpu.matmul %65, %67, %cst_43 {dimension_numbers = #tpu.dot_dimension_numbers<[1], [0], [0], [1], [0, 0, 1, 1], [], []>} : vector<128x24xbf16>, vector<24x128xbf16>, vector<128x128xf32> -> vector<128x128xf32>
      %c0_44 = arith.constant 0 : index
      %c0_45 = arith.constant 0 : index
      %c0_46 = arith.constant 0 : index
      %69 = vector.load %arg8[%c0_44, %c0_45, %c0_46] : memref<1x1x128xf32, #tpu.memory_space<vmem>>, vector<1x1x128xf32>
      %70 = vector.shape_cast %69 : vector<1x1x128xf32> to vector<1x128xf32>
      %71 = vector.broadcast %70 : vector<1x128xf32> to vector<128x128xf32>
      %72 = arith.addf %68, %71 : vector<128x128xf32>
      %c0_47 = arith.constant 0 : index
      %c0_48 = arith.constant 0 : index
      %c0_49 = arith.constant 0 : index
      %73 = vector.load %arg9[%c0_47, %c0_48, %c0_49] : memref<1x24x128xbf16, #tpu.memory_space<vmem>>, vector<1x24x128xbf16>
      %74 = vector.shape_cast %73 : vector<1x24x128xbf16> to vector<24x128xbf16>
      %cst_50 = arith.constant dense<0.000000e+00> : vector<128x128xf32>
      %75 = tpu.matmul %65, %74, %cst_50 {dimension_numbers = #tpu.dot_dimension_numbers<[1], [0], [0], [1], [0, 0, 1, 1], [], []>} : vector<128x24xbf16>, vector<24x128xbf16>, vector<128x128xf32> -> vector<128x128xf32>
      %c0_51 = arith.constant 0 : index
      %c0_52 = arith.constant 0 : index
      %c0_53 = arith.constant 0 : index
      %76 = vector.load %arg10[%c0_51, %c0_52, %c0_53] : memref<1x1x128xf32, #tpu.memory_space<vmem>>, vector<1x1x128xf32>
      %77 = vector.shape_cast %76 : vector<1x1x128xf32> to vector<1x128xf32>
      %78 = vector.broadcast %77 : vector<1x128xf32> to vector<128x128xf32>
      %79 = arith.addf %75, %78 : vector<128x128xf32>
      %80 = arith.truncf %72 : vector<128x128xf32> to vector<128x128xbf16>
      %81 = arith.index_cast %arg2 : i32 to index
      %c0_54 = arith.constant 0 : index
      %c0_55 = arith.constant 0 : index
      %82 = vector.load %arg14[%81, %c0_54, %c0_55] : memref<4x128x128xbf16, #tpu.memory_space<vmem>>, vector<1x128x128xbf16>
      %83 = vector.shape_cast %82 : vector<1x128x128xbf16> to vector<128x128xbf16>
      %84 = vector.shape_cast %80 : vector<128x128xbf16> to vector<1x128x128xbf16>
      tpu.vector_store %arg14[%81, %c0_54, %c0_55], %84 {strides = array<i32>} : memref<4x128x128xbf16, #tpu.memory_space<vmem>>, vector<1x128x128xbf16>,
      %85 = arith.truncf %79 : vector<128x128xf32> to vector<128x128xbf16>
      %86 = arith.index_cast %arg2 : i32 to index
      %c0_56 = arith.constant 0 : index
      %c0_57 = arith.constant 0 : index
      %87 = vector.load %arg15[%86, %c0_56, %c0_57] : memref<4x128x128xbf16, #tpu.memory_space<vmem>>, vector<1x128x128xbf16>
      %88 = vector.shape_cast %87 : vector<1x128x128xbf16> to vector<128x128xbf16>
      %89 = vector.shape_cast %85 : vector<128x128xbf16> to vector<1x128x128xbf16>
      tpu.vector_store %arg15[%86, %c0_56, %c0_57], %89 {strides = array<i32>} : memref<4x128x128xbf16, #tpu.memory_space<vmem>>, vector<1x128x128xbf16>,
    } else {
    }
    %c0_i32_1 = arith.constant 0 : i32
    %3 = arith.cmpi eq, %arg2, %c0_i32_1 : i32
    %4 = arith.extui %3 : i1 to i32
    %c0_i32_2 = arith.constant 0 : i32
    %5 = arith.cmpi ne, %4, %c0_i32_2 : i32
    scf.if %5 {
      %cst_27 = arith.constant 0.000000e+00 : f32
      %52 = vector.broadcast %cst_27 : f32 to vector<16x32xf32>
      %c0_28 = arith.constant 0 : index
      %c0_29 = arith.constant 0 : index
      %53 = vector.load %arg18[%c0_28, %c0_29] : memref<16x32xf32, #tpu.memory_space<vmem>>, vector<16x32xf32>
      tpu.vector_store %arg18[%c0_28, %c0_29], %52 {strides = array<i32>} : memref<16x32xf32, #tpu.memory_space<vmem>>, vector<16x32xf32>,
    } else {
    }
    %c0 = arith.constant 0 : index
    %c0_3 = arith.constant 0 : index
    %c0_4 = arith.constant 0 : index
    %6 = vector.load %arg3[%c0, %c0_3, %c0_4] : memref<1x16x32xbf16, #tpu.memory_space<vmem>>, vector<1x16x32xbf16>
    %7 = vector.shape_cast %6 : vector<1x16x32xbf16> to vector<16x32xbf16>
    %8 = arith.index_cast %arg2 : i32 to index
    %c0_5 = arith.constant 0 : index
    %c0_6 = arith.constant 0 : index
    %9 = vector.load %arg16[%8, %c0_5, %c0_6] : memref<4x32x128xbf16, #tpu.memory_space<vmem>>, vector<1x32x128xbf16>
    %10 = vector.shape_cast %9 : vector<1x32x128xbf16> to vector<32x128xbf16>
    %cst = arith.constant dense<0.000000e+00> : vector<16x128xf32>
    %11 = tpu.matmul %7, %10, %cst {dimension_numbers = #tpu.dot_dimension_numbers<[1], [0], [0], [1], [0, 0, 1, 1], [], []>} : vector<16x32xbf16>, vector<32x128xbf16>, vector<16x128xf32> -> vector<16x128xf32>
    %c0_7 = arith.constant 0 : index
    %c0_8 = arith.constant 0 : index
    %c0_9 = arith.constant 0 : index
    %12 = vector.load %arg6[%c0_7, %c0_8, %c0_9] : memref<1x1x128xf32, #tpu.memory_space<vmem>>, vector<1x1x128xf32>
    %13 = vector.shape_cast %12 : vector<1x1x128xf32> to vector<1x128xf32>
    %14 = vector.broadcast %13 : vector<1x128xf32> to vector<16x128xf32>
    %15 = arith.addf %11, %14 : vector<16x128xf32>
    %16 = arith.truncf %15 : vector<16x128xf32> to vector<16x128xbf16>
    %17 = arith.index_cast %arg2 : i32 to index
    %c0_10 = arith.constant 0 : index
    %c0_11 = arith.constant 0 : index
    %18 = vector.load %arg14[%17, %c0_10, %c0_11] : memref<4x128x128xbf16, #tpu.memory_space<vmem>>, vector<1x128x128xbf16>
    %19 = vector.shape_cast %18 : vector<1x128x128xbf16> to vector<128x128xbf16>
    %20 = arith.index_cast %arg2 : i32 to index
    %c0_12 = arith.constant 0 : index
    %c0_13 = arith.constant 0 : index
    %21 = vector.load %arg15[%20, %c0_12, %c0_13] : memref<4x128x128xbf16, #tpu.memory_space<vmem>>, vector<1x128x128xbf16>
    %22 = vector.shape_cast %21 : vector<1x128x128xbf16> to vector<128x128xbf16>
    %cst_14 = arith.constant dense<0.000000e+00> : vector<16x128xf32>
    %23 = tpu.matmul %16, %19, %cst_14 {dimension_numbers = #tpu.dot_dimension_numbers<[1], [1], [0], [0], [0, 0, 1, 0], [], []>} : vector<16x128xbf16>, vector<128x128xbf16>, vector<16x128xf32> -> vector<16x128xf32>
    %24 = tpu.iota {dimensions = array<i32: 1>} : vector<16x128xi32>
    %c8_i32 = arith.constant 8 : i32
    %25 = vector.broadcast %c8_i32 : i32 to vector<16x128xi32>
    %26 = arith.cmpi slt, %24, %25 : vector<16x128xi32>
    %cst_15 = arith.constant -1.000000e+30 : f32
    %27 = vector.broadcast %cst_15 : f32 to vector<16x128xf32>
    %28 = arith.select %26, %23, %27 : vector<16x128xi1>, vector<16x128xf32>
    %cst_16 = arith.constant dense<0xFF800000> : vector<16xf32>
    %29 = vector.multi_reduction <maximumf>, %28, %cst_16 [1] : vector<16x128xf32> to vector<16xf32>
    %30 = vector.shape_cast %29 : vector<16xf32> to vector<16x1xf32>
    %31 = vector.broadcast %30 : vector<16x1xf32> to vector<16x128xf32>
    %32 = arith.subf %28, %31 : vector<16x128xf32>
    %33 = math.exp %32 : vector<16x128xf32>
    %cst_17 = arith.constant dense<0.000000e+00> : vector<16xf32>
    %34 = vector.multi_reduction <add>, %33, %cst_17 [1] : vector<16x128xf32> to vector<16xf32>
    %35 = vector.shape_cast %34 : vector<16xf32> to vector<16x1xf32>
    %36 = tpu.reciprocal %35 {approx = true} : vector<16x1xf32> -> vector<16x1xf32>
    %37 = vector.broadcast %36 : vector<16x1xf32> to vector<16x128xf32>
    %38 = arith.mulf %33, %37 : vector<16x128xf32>
    %39 = arith.truncf %38 : vector<16x128xf32> to vector<16x128xbf16>
    %cst_18 = arith.constant dense<0.000000e+00> : vector<16x128xf32>
    %40 = tpu.matmul %39, %22, %cst_18 {dimension_numbers = #tpu.dot_dimension_numbers<[1], [0], [0], [1], [0, 0, 1, 1], [], []>} : vector<16x128xbf16>, vector<128x128xbf16>, vector<16x128xf32> -> vector<16x128xf32>
    %c0_19 = arith.constant 0 : index
    %c0_20 = arith.constant 0 : index
    %41 = vector.load %arg18[%c0_19, %c0_20] : memref<16x32xf32, #tpu.memory_space<vmem>>, vector<16x32xf32>
    %42 = arith.truncf %40 : vector<16x128xf32> to vector<16x128xbf16>
    %43 = arith.index_cast %arg2 : i32 to index
    %c0_21 = arith.constant 0 : index
    %c0_22 = arith.constant 0 : index
    %44 = vector.load %arg17[%43, %c0_21, %c0_22] : memref<4x128x32xbf16, #tpu.memory_space<vmem>>, vector<1x128x32xbf16>
    %45 = vector.shape_cast %44 : vector<1x128x32xbf16> to vector<128x32xbf16>
    %cst_23 = arith.constant dense<0.000000e+00> : vector<16x32xf32>
    %46 = tpu.matmul %42, %45, %cst_23 {dimension_numbers = #tpu.dot_dimension_numbers<[1], [0], [0], [1], [0, 0, 1, 1], [], []>} : vector<16x128xbf16>, vector<128x32xbf16>, vector<16x32xf32> -> vector<16x32xf32>
    %47 = arith.addf %41, %46 : vector<16x32xf32>
    %c0_24 = arith.constant 0 : index
    %c0_25 = arith.constant 0 : index
    %48 = vector.load %arg18[%c0_24, %c0_25] : memref<16x32xf32, #tpu.memory_space<vmem>>, vector<16x32xf32>
    tpu.vector_store %arg18[%c0_24, %c0_25], %47 {strides = array<i32>} : memref<16x32xf32, #tpu.memory_space<vmem>>, vector<16x32xf32>,
    %c3_i32 = arith.constant 3 : i32
    %49 = arith.cmpi eq, %arg2, %c3_i32 : i32
    %50 = arith.extui %49 : i1 to i32
    %c0_i32_26 = arith.constant 0 : i32
    %51 = arith.cmpi ne, %50, %c0_i32_26 : i32
    scf.if %51 {
      %c0_27 = arith.constant 0 : index
      %c0_28 = arith.constant 0 : index
      %52 = vector.load %arg18[%c0_27, %c0_28] : memref<16x32xf32, #tpu.memory_space<vmem>>, vector<16x32xf32>
      %c0_29 = arith.constant 0 : index
      %c0_30 = arith.constant 0 : index
      %53 = vector.load %arg12[%c0_29, %c0_30] : memref<1x32xf32, #tpu.memory_space<vmem>>, vector<1x32xf32>
      %54 = vector.broadcast %53 : vector<1x32xf32> to vector<16x32xf32>
      %55 = arith.addf %52, %54 : vector<16x32xf32>
      %c0_31 = arith.constant 0 : index
      %c0_32 = arith.constant 0 : index
      %c0_33 = arith.constant 0 : index
      %56 = vector.load %arg13[%c0_31, %c0_32, %c0_33] : memref<1x16x32xf32, #tpu.memory_space<vmem>>, vector<1x16x32xf32>
      %57 = vector.shape_cast %56 : vector<1x16x32xf32> to vector<16x32xf32>
      %58 = vector.shape_cast %55 : vector<16x32xf32> to vector<1x16x32xf32>
      tpu.vector_store %arg13[%c0_31, %c0_32, %c0_33], %58 {strides = array<i32>} : memref<1x16x32xf32, #tpu.memory_space<vmem>>, vector<1x16x32xf32>,
    } else {
    }
    return
  }
  func.func @transform_0(%arg0: i32, %arg1: i32, %arg2: i32) -> (i32, i32, i32) {
    %c0_i32 = arith.constant 0 : i32
    %c0_i32_0 = arith.constant 0 : i32
    return %arg0, %arg1, %c0_i32 : i32, i32, i32
  }
  func.func @transform_1(%arg0: i32, %arg1: i32, %arg2: i32) -> (i32, i32, i32) {
    %c0_i32 = arith.constant 0 : i32
    %c0_i32_0 = arith.constant 0 : i32
    %c0_i32_1 = arith.constant 0 : i32
    return %arg0, %c0_i32, %c0_i32_0 : i32, i32, i32
  }
  func.func @transform_2(%arg0: i32, %arg1: i32, %arg2: i32) -> (i32, i32, i32) {
    %c0_i32 = arith.constant 0 : i32
    %0 = arith.cmpi eq, %arg1, %c0_i32 : i32
    %c3_i32 = arith.constant 3 : i32
    %1 = arith.select %0, %arg2, %c3_i32 : i32
    %c0_i32_0 = arith.constant 0 : i32
    %c0_i32_1 = arith.constant 0 : i32
    %c0_i32_2 = arith.constant 0 : i32
    return %1, %c0_i32_0, %c0_i32_1 : i32, i32, i32
  }
  func.func @transform_3(%arg0: i32, %arg1: i32, %arg2: i32) -> (i32, i32, i32) {
    %c0_i32 = arith.constant 0 : i32
    %c0_i32_0 = arith.constant 0 : i32
    %c0_i32_1 = arith.constant 0 : i32
    return %arg2, %c0_i32, %c0_i32_0 : i32, i32, i32
  }
  func.func @transform_4(%arg0: i32, %arg1: i32, %arg2: i32) -> (i32, i32, i32) {
    %c0_i32 = arith.constant 0 : i32
    %0 = arith.cmpi eq, %arg1, %c0_i32 : i32
    %c3_i32 = arith.constant 3 : i32
    %1 = arith.select %0, %arg2, %c3_i32 : i32
    %c0_i32_0 = arith.constant 0 : i32
    %c0_i32_1 = arith.constant 0 : i32
    %c0_i32_2 = arith.constant 0 : i32
    return %1, %c0_i32_0, %c0_i32_1 : i32, i32, i32
  }
  func.func @transform_5(%arg0: i32, %arg1: i32, %arg2: i32) -> (i32, i32, i32) {
    %c0_i32 = arith.constant 0 : i32
    %0 = arith.cmpi eq, %arg1, %c0_i32 : i32
    %c3_i32 = arith.constant 3 : i32
    %1 = arith.select %0, %arg2, %c3_i32 : i32
    %c0_i32_0 = arith.constant 0 : i32
    %c0_i32_1 = arith.constant 0 : i32
    %c0_i32_2 = arith.constant 0 : i32
    return %1, %c0_i32_0, %c0_i32_1 : i32, i32, i32
  }
  func.func @transform_6(%arg0: i32, %arg1: i32, %arg2: i32) -> (i32, i32, i32) {
    %c0_i32 = arith.constant 0 : i32
    %0 = arith.cmpi eq, %arg1, %c0_i32 : i32
    %c3_i32 = arith.constant 3 : i32
    %1 = arith.select %0, %arg2, %c3_i32 : i32
    %c0_i32_0 = arith.constant 0 : i32
    %c0_i32_1 = arith.constant 0 : i32
    %c0_i32_2 = arith.constant 0 : i32
    return %1, %c0_i32_0, %c0_i32_1 : i32, i32, i32
  }
  func.func @transform_7(%arg0: i32, %arg1: i32, %arg2: i32) -> (i32, i32, i32) {
    %c0_i32 = arith.constant 0 : i32
    %0 = arith.cmpi eq, %arg1, %c0_i32 : i32
    %c3_i32 = arith.constant 3 : i32
    %1 = arith.select %0, %arg2, %c3_i32 : i32
    %c0_i32_0 = arith.constant 0 : i32
    %c0_i32_1 = arith.constant 0 : i32
    %c0_i32_2 = arith.constant 0 : i32
    return %1, %c0_i32_0, %c0_i32_1 : i32, i32, i32
  }
  func.func @transform_8(%arg0: i32, %arg1: i32, %arg2: i32) -> (i32, i32, i32) {
    %c0_i32 = arith.constant 0 : i32
    %0 = arith.cmpi eq, %arg1, %c0_i32 : i32
    %c3_i32 = arith.constant 3 : i32
    %1 = arith.select %0, %arg2, %c3_i32 : i32
    %c0_i32_0 = arith.constant 0 : i32
    %c0_i32_1 = arith.constant 0 : i32
    %c0_i32_2 = arith.constant 0 : i32
    return %1, %c0_i32_0, %c0_i32_1 : i32, i32, i32
  }
  func.func @transform_9(%arg0: i32, %arg1: i32, %arg2: i32) -> (i32, i32) {
    %c0_i32 = arith.constant 0 : i32
    %c0_i32_0 = arith.constant 0 : i32
    %c0_i32_1 = arith.constant 0 : i32
    return %c0_i32, %c0_i32_0 : i32, i32
  }
  func.func @transform_10(%arg0: i32, %arg1: i32, %arg2: i32) -> (i32, i32, i32) {
    %c0_i32 = arith.constant 0 : i32
    %c0_i32_0 = arith.constant 0 : i32
    return %arg0, %arg1, %c0_i32 : i32, i32, i32
  }
}

</mosaic_0001>

<bundles_post_ra>
// kernel: tpu_custom_call.1
= control target key start
LH: loop header
LB: loop body
LE: loop exit
PB: predicated region body
PF: predicated region fallthrough
CT: control target
= control target key end

     0   :  { %s3565_s0 = inlined_call_operand.hbm [shape: bf16[2,16,32], index: 0, kind: input, shape index: {}]   ;;  %s3566_s1 = inlined_call_operand.hbm [shape: bf16[2,128,24], index: 1, kind: input, shape index: {}]   ;;  %s3567_s2 = inlined_call_operand.hbm [shape: bf16[4,32,128], index: 2, kind: input, shape index: {}]   ;;  %s3568_s3 = inlined_call_operand.hbm [shape: f32[4,1,128], index: 3, kind: input, shape index: {}]   ;;  %s3569_s4 = inlined_call_operand.hbm [shape: bf16[4,24,128], index: 4, kind: input, shape index: {}]   ;;  %s3570_s5 = inlined_call_operand.hbm [shape: f32[4,1,128], index: 5, kind: input, shape index: {}]   ;;  %s3571_s6 = inlined_call_operand.hbm [shape: bf16[4,24,128], index: 6, kind: input, shape index: {}]   ;;  %s3572_s7 = inlined_call_operand.hbm [shape: f32[4,1,128], index: 7, kind: input, shape index: {}]   ;;  %s3573_s8 = inlined_call_operand.hbm [shape: bf16[4,128,32], index: 8, kind: input, shape index: {}]   ;;  %s3574_s9 = inlined_call_operand.hbm [shape: f32[1,32], index: 9, kind: input, shape index: {}]   ;;  %s3575_s10 = inlined_call_operand.hbm [shape: f32[2,16,32], index: 10, kind: output, shape index: {}]  }
   0x1   :  { %3610 = sst [smem:[#allocation45_spill]] %s3566_s1 }
   0x2   :  { %3611 = sst [smem:[#allocation46_spill]] %s3567_s2 }
   0x3   :  { %3612 = sst [smem:[#allocation47_spill]] %s3568_s3 }
   0x4   :  { %3613 = sst [smem:[#allocation48_spill]] %s3569_s4 }
   0x5   :  { %3614 = sst [smem:[#allocation49_spill]] %s3570_s5 }
   0x6   :  { %3615 = sst [smem:[#allocation50_spill]] %s3571_s6 }
   0x7   :  { %3616 = sst [smem:[#allocation51_spill]] %s3572_s7 }
   0x8   :  { %3617 = sst [smem:[#allocation52_spill]] %s3573_s8 }
   0x9   :  { %3618 = sst [smem:[#allocation53_spill]] %s3575_s10 }
   0xa   :  { %15 = vsyncpa [#allocation8], 0 }
   0xb   :  { %17 = vsyncpa [#allocation8 + $0x1], 0 }
   0xc   :  { %18 = vsyncpa [#allocation11], 0 }
   0xd   :  { %20 = vsyncpa [#allocation11 + $0x1], 0 }
   0xe   :  { %21 = vsyncpa [#allocation14], 0 }
   0xf   :  { %23 = vsyncpa [#allocation14 + $0x1], 0 }
  0x10   :  { %24 = vsyncpa [#allocation17], 0 }
  0x11   :  { %26 = vsyncpa [#allocation17 + $0x1], 0 }
  0x12   :  { %27 = vsyncpa [#allocation20], 0 }
  0x13   :  { %29 = vsyncpa [#allocation20 + $0x1], 0 }
  0x14   :  { %30 = vsyncpa [#allocation23], 0 }
  0x15   :  { %31 = vsyncpa [#allocation9], 0 }
  0x16   :  { %33 = vsyncpa [#allocation9 + $0x1], 0  ;;  %s2771_s13 = smov 0   ;;  %s2773_s14 = smov 0  }
  0x17   :  { %s2775_s15 = smov 0   ;;  %s2777_s16 = smov 0  }
  0x18   :  { %s2779_s17 = smov 0   ;;  %s2781_s18 = smov 0  }
  0x19   :  { %s2783_s19 = smov 0   ;;  %s2785_s20 = smov 0  }
  0x1a   :  { %s2787_s21 = smov 0   ;;  %s2789_s22 = smov 0  }
  0x1b   :  { %s2791_s23 = smov 0  }
  0x1c LB: > { %3619 = sst [smem:[#allocation33_spill]] %s2664_s15  ;;  %p3578_p0 = scmp.ne.s32.totalorder %s2676_s18, %s2672_s17  ;;  %s2696_s23 = sphi %s2791_s23, %s39_s23   ;;  %s2692_s22 = sphi %s2789_s22, %s3690_s22   ;;  %s2688_s21 = sphi %s2787_s21, %s3696_s21   ;;  %s2684_s20 = sphi %s2785_s20, %s3688_s20   ;;  %s2680_s19 = sphi %s2783_s19, %s3695_s19   ;;  %s2676_s18 = sphi %s2781_s18, %s3687_s18   ;;  %s2672_s17 = sphi %s2779_s17, %s3694_s17   ;;  %s2668_s16 = sphi %s2777_s16, %s3693_s16   ;;  %s2664_s15 = sphi %s2775_s15, %s3685_s15   ;;  %s2660_s14 = sphi %s2773_s14, %s3692_s14   ;;  %s2656_s13 = sphi %s2771_s13, %s3691_s13  }
  0x1d   : > { %3620 = sst [smem:[#allocation34_spill]] %s2668_s16  ;;  %p75_p1 = scmp.eq.s32.totalorder %s2696_s23, 0 }
  0x1e   : > { %3621 = sst [smem:[#allocation35_spill]] %s2676_s18  ;;  %p3579_p2 = scmp.lt.s32.totalorder %s2696_s23, 8 }
  0x1f   : > { %3622 = sst [smem:[#allocation36_spill]] %s2680_s19  ;;  %p76_p3 = por %p75_p1, %p3578_p0 }
  0x20   : > { %3623 = sst [smem:[#allocation37_spill]] %s2684_s20  ;;  %s2838_s26 = sand.u32 1, %s2676_s18  }
  0x21   : > { %3624 = sst [smem:[#allocation38_spill]] %s2692_s22  ;;  %p2842_p4 = pnand %p3579_p2, %p76_p3 }
  0x22   : > { %3625 = sst [smem:[#allocation39_spill]] %s2696_s23  ;;  %s2847_s28 = sand.u32 1, %s2696_s23  }
  0x23   : > { %s3626_s27 = scalar_select %p2842_p4, 1, 0 }
  0x24   : > { %s1794_s29 = sshll.u32 %s2838_s26, 6  ;;  %s1879_s30 = sshll.u32 %s2692_s22, 10 }
  0x25   : > { %s423_s11 = scalar_lea.vmem [#allocation10], %s1794_s29  ;;  %s3627_s1 = sld [smem:[#allocation45_spill]] }
  0x26   : > { %s430_s12 = sshll.u32 %s423_s11, 4  ;;  %p3590_p6 = pneg %p2842_p4  ;;  %s2856_s12 = int_to_ptr.vmem [resolvable:$true] %s430_s12 }
  0x2b   : > { %s2854_s10 = scalar_lea.hbm %s3627_s1, %s1879_s30  ;;  %s2257_s24 = scalar_lea.hbm %s3627_s1, 2048 }
  0x2c   : > { %s2252_s19 = scalar_lea.hbm %s2854_s10, 1024  ;;  %p2258_p9 = scmp.lt.u32.totalorder %s2854_s10, %s3627_s1 }
  0x2d   : > { %p2253_p5 = scmp.ne.s32.totalorder %s2854_s10, %s2252_s19  ;;  %p2259_p10 = scmp.lt.u32.totalorder %s2257_s24, %s2252_s19 }
  0x2e   : > { %p2261_p12 = scmp.lt.u32.totalorder %s2252_s19, %s2854_s10 }
  0x2f   : > { %p2255_p7 = pnand %p3590_p6, %p2253_p5  ;;  %p2260_p11 = por %p2259_p10, %p2258_p9 }
  0x31   : > { %p2256_p8 = pneg %p2255_p7  ;;  %p2262_p13 = por %p2261_p12, %p2260_p11 }
  0x33   : > { %p2263_p3 = pnand %p2262_p13, %p2256_p8 }
  0x35   : > { %2266 = shalt.err (!%p2263_p3)
}
  0x36   : > { %s2267_s20 = scalar_lea.vmem %s2856_s12, 1024  ;;  %s2698_s29 = smov [#allocation10]  }
  0x37   : > { %p2268_p5 = scmp.ne.s32.totalorder %s2856_s12, %s2267_s20  ;;  %s2272_s11 = sshll.u32 %s2698_s29, 4  ;;  %s2273_s11 = int_to_ptr.vmem [resolvable:$false] %s2272_s11 }
  0x38   : > { %s2274_s25 = scalar_lea.vmem %s2273_s11, 2048  ;;  %p2275_p2 = scmp.lt.s32.totalorder %s2856_s12, %s2273_s11 }
  0x39   : > { %p2270_p7 = pnand %p2268_p5, %p3590_p6  ;;  %p2276_p9 = scmp.lt.s32.totalorder %s2274_s25, %s2267_s20 }
  0x3b   : > { %p2271_p0 = pneg %p2270_p7  ;;  %p2277_p10 = por %p2276_p9, %p2275_p2 }
  0x3d   : > { %p2278_p11 = pnand %p2277_p10, %p2271_p0 }
  0x3f   : > { %2281 = shalt.err (!%p2278_p11)
}
  0x40   : > { %s3580_s19 = smov 64   ;;  %s3582_s20 = smov 4  }
  0x41   : > { %s3628_s24 = scalar_lea.sflag [#allocation11], %s2847_s28  ;;  %s51_s30 = sadd.s32 1, %s2688_s21 }
  0x42   : > { %2095 = dma.hbm_to_vmem [thread:$0]  (!%p2842_p4), %s2854_s10, 1024, %s2856_s12, %s3628_s24, %s3580_s19, %s3580_s19, %s3582_s20  }
  0x43   : > { %s123_s29 = sadd.s32 1, %s2664_s15  ;;  %p52_p0 = scmp.ge.s32.totalorder %s51_s30, 4 }
  0x44   : > { %p130_p2 = scmp.ne.s32.totalorder %s2664_s15, %s2660_s14  ;;  %s2894_s11 = sand.u32 1, %s2664_s15  }
  0x45   : > { %s3698_s30 = smov (%p52_p0, %s51_s30), 0  ;;  %s3630_s25 = sadd.s32 1, %s2692_s22 }
  0x46   : > { %3629 = sst [smem:[#allocation40_spill]] %s3698_s30  ;;  %s3700_s25 = smov (!%p52_p0, %s3630_s25), %s2692_s22 }
  0x47   : > { %s120_s1 = ssub.s32 %s2688_s21, %s3698_s30  ;;  %p132_p8 = por %p130_p2, %p75_p1 }
  0x48   : > { %p60_p12 = scmp.ge.s32.totalorder %s3700_s25, 2  ;;  %p121_p13 = scmp.eq.s32.totalorder %s120_s1, 0 }
  0x49   : > { %p3631_p3 = scmp.lt.s32.totalorder %s2696_s23, 8  ;;  %s2919_s19 = sshll.u32 %s2688_s21, 4 }
  0x4a   : > { %s3702_s25 = smov (%p60_p12, %s3700_s25), 0  ;;  %s3635_s3 = sld [smem:[#allocation47_spill]] }
  0x4b   : > { %p2907_p5 = pnand %p3631_p3, %p132_p8  ;;  %3633 = sst [smem:[#allocation41_spill]] %s3702_s25 }
  0x4c   : > { %s2914_s12 = scalar_select %p121_p13, %s2664_s15, %s123_s29  }
  0x4d   : > { %s3632_s10 = scalar_select %p2907_p5, 1, 0 }
  0x4e   : > { %3634 = sst [smem:[#allocation42_spill]] %s2914_s12  ;;  %s62_s24 = ssub.s32 %s2692_s22, %s3702_s25 }
  0x4f   : > { %p65_p7 = scmp.eq.s32.totalorder %s62_s24, 0  ;;  %s466_s8 = scalar_lea.vmem [#allocation13], %s2894_s11 }
  0x50   : > { %s2925_s1 = scalar_lea.hbm %s3635_s3, %s2919_s19  ;;  %s473_s6 = sshll.u32 %s466_s8, 4  ;;  %s2933_s6 = int_to_ptr.vmem [resolvable:$true] %s473_s6 }
  0x51   : > { %s3636_s4 = sadd.s32 1, %s2676_s18  ;;  %s2282_s24 = scalar_lea.hbm %s2925_s1, 16 }
  0x52   : > { %s2931_s2 = scalar_select %p65_p7, %s2676_s18, %s3636_s4  }
  0x53   : > { %p2283_p1 = scmp.ne.s32.totalorder %s2925_s1, %s2282_s24  ;;  %p2940_p9 = pneg %p2907_p5 }
  0x54   : > { %3637 = sst [smem:[#allocation43_spill]] %s2931_s2  ;;  %s2287_s8 = scalar_lea.hbm %s3635_s3, 64 }
  0x55   : > { %s3638_s25 = scalar_select %p2940_p9, 1, 0 }
  0x56   : > { %p2285_p10 = pnand %p2940_p9, %p2283_p1  ;;  %p2288_p0 = scmp.lt.u32.totalorder %s2925_s1, %s3635_s3 }
  0x57   : > { %p2289_p2 = scmp.lt.u32.totalorder %s2287_s8, %s2282_s24  ;;  %p2291_p12 = scmp.lt.u32.totalorder %s2282_s24, %s2925_s1 }
  0x58   : > { %p2286_p11 = pneg %p2285_p10 }
  0x59   : > { %p2290_p8 = por %p2289_p2, %p2288_p0 }
  0x5b   : > { %p2292_p13 = por %p2291_p12, %p2290_p8 }
  0x5d   : > { %p2293_p3 = pnand %p2292_p13, %p2286_p11 }
  0x5f   : > { %2296 = shalt.err (!%p2293_p3)
}
  0x60   : > { %s2297_s29 = scalar_lea.vmem %s2933_s6, 16  ;;  %s2701_s20 = smov [#allocation13]  }
  0x61   : > { %p2298_p7 = scmp.ne.s32.totalorder %s2933_s6, %s2297_s29  ;;  %s2302_s30 = sshll.u32 %s2701_s20, 4  ;;  %s2303_s30 = int_to_ptr.vmem [resolvable:$false] %s2302_s30 }
  0x62   : > { %s2304_s2 = scalar_lea.vmem %s2303_s30, 32  ;;  %p2305_p6 = scmp.lt.s32.totalorder %s2933_s6, %s2303_s30 }
  0x63   : > { %p2300_p1 = pnand %p2298_p7, %p2940_p9  ;;  %p2306_p4 = scmp.lt.s32.totalorder %s2304_s2, %s2297_s29 }
  0x65   : > { %p2301_p10 = pneg %p2300_p1  ;;  %p2307_p0 = por %p2306_p4, %p2305_p6 }
  0x67   : > { %p2308_p2 = pnand %p2307_p0, %p2301_p10 }
  0x69   : > { %2311 = shalt.err (!%p2308_p2)
}
  0x6a   : > { %s3639_s24 = scalar_lea.sflag [#allocation14], %s2847_s28  ;;  %s3640_s5 = sld [smem:[#allocation49_spill]] }
  0x6b   : > { %2101 = dma.hbm_to_vmem [thread:$0]  (!%p2907_p5), %s2925_s1, 16, %s2933_s6, %s3639_s24  }
  0x6c   : > { %s506_s29 = scalar_lea.vmem [#allocation16], %s2894_s11 }
  0x6d   : > { %s515_s30 = sshll.u32 %s506_s29, 4  ;;  %s516_s30 = int_to_ptr.vmem [resolvable:$true] %s515_s30 }
  0x70   : > { %s2969_s20 = scalar_lea.hbm %s3640_s5, %s2919_s19  ;;  %s2317_s1 = scalar_lea.hbm %s3640_s5, 64 }
  0x71   : > { %s2312_s3 = scalar_lea.hbm %s2969_s20, 16  ;;  %p2318_p8 = scmp.lt.u32.totalorder %s2969_s20, %s3640_s5 }
  0x72   : > { %p2313_p4 = scmp.ne.s32.totalorder %s2969_s20, %s2312_s3  ;;  %p2319_p12 = scmp.lt.u32.totalorder %s2317_s1, %s2312_s3 }
  0x73   : > { %p2321_p3 = scmp.lt.u32.totalorder %s2312_s3, %s2969_s20 }
  0x74   : > { %p2315_p6 = pnand %p2313_p4, %p2940_p9  ;;  %p2320_p13 = por %p2319_p12, %p2318_p8 }
  0x76   : > { %p2316_p11 = pneg %p2315_p6  ;;  %p2322_p7 = por %p2321_p3, %p2320_p13 }
  0x78   : > { %p2323_p1 = pnand %p2322_p7, %p2316_p11 }
  0x7a   : > { %2326 = shalt.err (!%p2323_p1)
}
  0x7b   : > { %s2327_s4 = scalar_lea.vmem %s516_s30, 16  ;;  %s2702_s29 = smov [#allocation16]  }
  0x7c   : > { %p2328_p10 = scmp.ne.s32.totalorder %s516_s30, %s2327_s4  ;;  %s2332_s2 = sshll.u32 %s2702_s29, 4  ;;  %s2333_s2 = int_to_ptr.vmem [resolvable:$false] %s2332_s2 }
  0x7d   : > { %s2334_s12 = scalar_lea.vmem %s2333_s2, 32  ;;  %p2335_p4 = scmp.lt.s32.totalorder %s516_s30, %s2333_s2 }
  0x7e   : > { %p2330_p0 = pnand %p2328_p10, %p2940_p9  ;;  %p2336_p6 = scmp.lt.s32.totalorder %s2334_s12, %s2327_s4 }
  0x80   : > { %p2331_p2 = pneg %p2330_p0  ;;  %p2337_p5 = por %p2336_p6, %p2335_p4 }
  0x82   : > { %p2338_p8 = pnand %p2337_p5, %p2331_p2 }
  0x84   : > { %2341 = shalt.err (!%p2338_p8)
}
  0x85   : > { %p3641_p12 = scmp.ne.s32.totalorder %s3632_s10, 0  ;;  %s3642_s3 = scalar_lea.sflag [#allocation17], %s2847_s28 }
  0x86   : > { %s3643_s7 = sld [smem:[#allocation51_spill]]  ;;  %s548_s2 = scalar_lea.vmem [#allocation19], %s2894_s11 }
  0x87   : > { %2107 = dma.hbm_to_vmem [thread:$0]  (!%p3641_p12), %s2969_s20, 16, %s516_s30, %s3642_s3  }
  0x88   : > { %s557_s8 = sshll.u32 %s548_s2, 4  ;;  %s3595_s4 = scalar_lea.sflag [#allocation20], %s2847_s28  ;;  %s558_s8 = int_to_ptr.vmem [resolvable:$true] %s557_s8 }
  0x8c   : > { %s2996_s24 = scalar_lea.hbm %s3643_s7, %s2919_s19  ;;  %s2347_s30 = scalar_lea.hbm %s3643_s7, 64 }
  0x8d   : > { %s2342_s29 = scalar_lea.hbm %s2996_s24, 16  ;;  %p2348_p3 = scmp.lt.u32.totalorder %s2996_s24, %s3643_s7 }
  0x8e   : > { %p2343_p5 = scmp.ne.s32.totalorder %s2996_s24, %s2342_s29  ;;  %p2349_p7 = scmp.lt.u32.totalorder %s2347_s30, %s2342_s29 }
  0x8f   : > { %p2351_p10 = scmp.lt.u32.totalorder %s2342_s29, %s2996_s24 }
  0x90   : > { %p2345_p11 = pnand %p2343_p5, %p2940_p9  ;;  %p2350_p1 = por %p2349_p7, %p2348_p3 }
  0x92   : > { %p2346_p13 = pneg %p2345_p11  ;;  %p2352_p0 = por %p2351_p10, %p2350_p1 }
  0x94   : > { %p2353_p2 = pnand %p2352_p0, %p2346_p13 }
  0x96   : > { %2356 = shalt.err (!%p2353_p2)
}
  0x97   : > { %s2357_s6 = scalar_lea.vmem %s558_s8, 16  ;;  %s2703_s1 = smov [#allocation19]  }
  0x98   : > { %p2358_p4 = scmp.ne.s32.totalorder %s558_s8, %s2357_s6  ;;  %s2362_s2 = sshll.u32 %s2703_s1, 4  ;;  %s2363_s2 = int_to_ptr.vmem [resolvable:$false] %s2362_s2 }
  0x99   : > { %s2364_s12 = scalar_lea.vmem %s2363_s2, 32  ;;  %p2365_p5 = scmp.lt.s32.totalorder %s558_s8, %s2363_s2 }
  0x9a   : > { %p2360_p6 = pnand %p2358_p4, %p2940_p9  ;;  %p2366_p11 = scmp.lt.s32.totalorder %s2364_s12, %s2357_s6 }
  0x9c   : > { %p2361_p8 = pneg %p2360_p6  ;;  %p2367_p12 = por %p2366_p11, %p2365_p5 }
  0x9e   : > { %p2368_p3 = pnand %p2367_p12, %p2361_p8 }
  0xa0   : > { %2371 = shalt.err (!%p2368_p3)
}
  0xa1   : > { %p3644_p7 = scmp.ne.s32.totalorder %s3632_s10, 0  ;;  %s3020_s29 = sadd.s32 4294967295, %s2696_s23  }
  0xa2   : > { %s1787_s20 = sadd.s32 4294967294, %s2696_s23   ;;  %p80_p12 = scmp.ne.s32.totalorder %s2672_s17, %s2668_s16 }
  0xa3   : > { %2113 = dma.hbm_to_vmem [thread:$0]  (!%p3644_p7), %s2996_s24, 16, %s558_s8, %s3595_s4  }
  0xa4   : > { %p3603_p13 = scmp.eq.s32.totalorder %s3020_s29, 0  ;;  %p136_p1 = scmp.ne.s32.totalorder %s2660_s14, %s2656_s13 }
  0xa5   : > { %p359_p10 = scmp.eq.s32.totalorder %s3020_s29, 7  ;;  %p365_p0 = scmp.eq.s32.totalorder %s1787_s20, 7 }
  0xa6   : > { %p3031_p2 = por %p3603_p13, %p80_p12  ;;  %p3037_p4 = por %p136_p1, %p3603_p13 }
  0xa7   : > { %p3647_p6 = scmp.ne.s32.totalorder %s2676_s18, %s2672_s17  ;;  %p3048_p5 = por %p365_p0, %p80_p12 }
  0xa8   : > { %s3645_s30 = scalar_select %p3031_p2, 1, 0 }
  0xa9   : > { %s3646_s24 = scalar_select %p3037_p4, 1, 0 }
  0xaa   : > { %p3044_p8 = por %p359_p10, %p3647_p6  ;;  %p1788_p11 = scmp.ge.s32.totalorder %s2696_s23, 1 }
  0xab   : > { %s3649_s13 = scalar_select %p3048_p5, 1, 0 }
  0xac   : > { %s3648_s8 = scalar_select %p3044_p8, 1, 0 }
  0xad   : > { %3650 = sst [smem:[#allocation44_spill]] %s3649_s13  ;;  %p372_p3 = scmp.lt.s32.totalorder %s2696_s23, 9 }
  0xae   : > { %s2704_s19 = smov [#allocation22]   ;;  %s1791_s1 = sshll.u32 %s2838_s26, 3 }
  0xaf   : > { %p3054_p7 = pnand %p1788_p11, %p372_p3  ;;  %s385_s6 = sshll.u32 %s2704_s19, 4  ;;  %s386_s6 = int_to_ptr.vmem [resolvable:$true] %s385_s6 }
  0xb0   : > { %s1878_s2 = sshll.u32 %s2692_s22, 7  ;;  %s400_s7 = scalar_lea.vmem [#allocation7], %s1791_s1 }
  0xb1   : > { %s3651_s3 = scalar_select %p3054_p7, 1, 0 }
  0xb2   : > { %p2085_p1 = pneg %p3054_p7  ;;  %s3071_s5 = scalar_lea.hbm %s3565_s0, %s1878_s2 }
  0xb3   : > { %s409_s18 = sshll.u32 %s400_s7, 4  ;;  %s1797_s15 = sshll.u32 %s2894_s11, 4  ;;  %s3074_s18 = int_to_ptr.vmem [resolvable:$true] %s409_s18 }
  0xb4   : > { %p3064_p10 = pnand %p2085_p1, %p3603_p13  ;;  %s2372_s22 = scalar_lea.hbm %s3574_s9, 16 }
  0xb5   : > { %p2373_p12 = scmp.ne.s32.totalorder %s3574_s9, %s2372_s22  ;;  %p2379_p3 = scmp.lt.u32.totalorder %s2372_s22, %s3574_s9 }
  0xb6   : > { %p2374_p0 = pneg %p3064_p10 }
  0xb8   : > { %p2375_p6 = pnand %p2374_p0, %p2373_p12 }
  0xba   : > { %p2376_p11 = pneg %p2375_p6 }
  0xbc   : > { %p2381_p1 = pnand %p2379_p3, %p2376_p11 }
  0xbe   : > { %2384 = shalt.err (!%p2381_p1)
}
  0xbf   : > { %s2385_s7 = scalar_lea.vmem %s386_s6, 16  ;;  %s2392_s13 = scalar_lea.vmem %s386_s6, 32 }
  0xc0   : > { %p2386_p13 = scmp.ne.s32.totalorder %s386_s6, %s2385_s7  ;;  %p2393_p4 = scmp.lt.s32.totalorder %s386_s6, %s386_s6 }
  0xc1   : > { %p2394_p2 = scmp.lt.s32.totalorder %s2392_s13, %s2385_s7 }
  0xc2   : > { %p2388_p5 = pnand %p2386_p13, %p2374_p0 }
  0xc3   : > { %p2395_p7 = por %p2394_p2, %p2393_p4 }
  0xc4   : > { %p2389_p8 = pneg %p2388_p5 }
  0xc6   : > { %p2396_p9 = pnand %p2395_p7, %p2389_p8 }
  0xc8   : > { %2399 = shalt.err (!%p2396_p9)
}
  0xc9   : > { %2088 = dma.hbm_to_vmem [thread:$0]  (!%p3064_p10), %s3574_s9, 16, %s386_s6, [#allocation23]  }
  0xca   : > { %s397_s22 = scalar_lea.sflag [#allocation8], %s2838_s26  ;;  %s2400_s1 = scalar_lea.hbm %s3071_s5, 128 }
  0xcb   : > { %p2401_p13 = scmp.ne.s32.totalorder %s3071_s5, %s2400_s1  ;;  %p3653_p5 = scmp.ne.s32.totalorder %s3626_s27, 0 }
  0xcc   : > { %s2405_s12 = scalar_lea.hbm %s3565_s0, 256  ;;  %p2406_p9 = scmp.lt.u32.totalorder %s3071_s5, %s3565_s0 }
  0xcd   : > { %p3654_p12 = pneg %p3653_p5  ;;  %p2407_p4 = scmp.lt.u32.totalorder %s2405_s12, %s2400_s1 }
  0xce   : > { %p2409_p0 = scmp.lt.u32.totalorder %s2400_s1, %s3071_s5 }
  0xcf   : > { %p2403_p2 = pnand %p2401_p13, %p3654_p12  ;;  %p2408_p8 = por %p2407_p4, %p2406_p9 }
  0xd1   : > { %p2404_p7 = pneg %p2403_p2  ;;  %p2410_p6 = por %p2409_p0, %p2408_p8 }
  0xd3   : > { %p2411_p10 = pnand %p2410_p6, %p2404_p7 }
  0xd5   : > { %2414 = shalt.err (!%p2411_p10)
}
  0xd6   : > { %s2415_s6 = scalar_lea.vmem %s3074_s18, 128  ;;  %p3655_p3 = pmov %p3654_p12 }
  0xd7   : > { %p2416_p11 = scmp.ne.s32.totalorder %s3074_s18, %s2415_s6  ;;  %s2705_s7 = smov [#allocation7]  }
  0xd8   : > { %s2420_s13 = sshll.u32 %s2705_s7, 4  ;;  %s2421_s13 = int_to_ptr.vmem [resolvable:$false] %s2420_s13 }
  0xd9   : > { %p2418_p1 = pnand %p2416_p11, %p3655_p3  ;;  %s2422_s16 = scalar_lea.vmem %s2421_s13, 256 }
  0xda   : > { %p2423_p12 = scmp.lt.s32.totalorder %s3074_s18, %s2421_s13  ;;  %p2424_p2 = scmp.lt.s32.totalorder %s2422_s16, %s2415_s6 }
  0xdb   : > { %p2419_p13 = pneg %p2418_p1 }
  0xdc   : > { %p2425_p9 = por %p2424_p2, %p2423_p12 }
  0xde   : > { %p2426_p4 = pnand %p2425_p9, %p2419_p13 }
  0xe0   : > { %2429 = shalt.err (!%p2426_p4)
}
  0xe1   : > { %s3656_s23 = smov 4   ;;  %s3657_s1 = smov 64  }
  0xe2   : > { %2092 = dma.hbm_to_vmem [thread:$0]  (!%p3653_p5), %s3071_s5, 128, %s3074_s18, %s397_s22, %s3657_s1, %s3657_s1, %s3656_s23  }
  0xe3   : > { %s1880_s20 = sshll.u32 %s2688_s21, 8  ;;  %s3658_s4 = sld [smem:[#allocation46_spill]] }
  0xe4   : > { %s444_s27 = scalar_lea.vmem [#allocation12], %s1797_s15  ;;  %s2056_s6 = smul.u32 12, %s2894_s11 }
  0xe5   : > { %s453_s26 = sshll.u32 %s444_s27, 4  ;;  %p3659_p8 = scmp.ne.s32.totalorder %s3638_s25, 0  ;;  %s3129_s26 = int_to_ptr.vmem [resolvable:$true] %s453_s26 }
  0xe9   : > { %s3125_s2 = scalar_lea.hbm %s3658_s4, %s1880_s20  ;;  %s2435_s22 = scalar_lea.hbm %s3658_s4, 1024 }
  0xea   : > { %s2430_s7 = scalar_lea.hbm %s3125_s2, 256  ;;  %p2436_p6 = scmp.lt.u32.totalorder %s3125_s2, %s3658_s4 }
  0xeb   : > { %p2431_p7 = scmp.ne.s32.totalorder %s3125_s2, %s2430_s7  ;;  %p2437_p10 = scmp.lt.u32.totalorder %s2435_s22, %s2430_s7 }
  0xec   : > { %p2439_p3 = scmp.lt.u32.totalorder %s2430_s7, %s3125_s2 }
  0xed   : > { %p2433_p5 = pnand %p2431_p7, %p3659_p8  ;;  %p2438_p11 = por %p2437_p10, %p2436_p6 }
  0xef   : > { %p2434_p0 = pneg %p2433_p5  ;;  %p2440_p1 = por %p2439_p3, %p2438_p11 }
  0xf1   : > { %p2441_p13 = pnand %p2440_p1, %p2434_p0 }
  0xf3   : > { %2444 = shalt.err (!%p2441_p13)
}
  0xf4   : > { %s2445_s15 = scalar_lea.vmem %s3129_s26, 256  ;;  %s2706_s20 = smov [#allocation12]  }
  0xf5   : > { %p2446_p12 = scmp.ne.s32.totalorder %s3129_s26, %s2445_s15  ;;  %s2450_s19 = sshll.u32 %s2706_s20, 4  ;;  %s2451_s19 = int_to_ptr.vmem [resolvable:$false] %s2450_s19 }
  0xf6   : > { %s2452_s12 = scalar_lea.vmem %s2451_s19, 512  ;;  %p2453_p4 = scmp.lt.s32.totalorder %s3129_s26, %s2451_s19 }
  0xf7   : > { %p2448_p2 = pnand %p2446_p12, %p3659_p8  ;;  %p2454_p7 = scmp.lt.s32.totalorder %s2452_s12, %s2445_s15 }
  0xf9   : > { %p2449_p9 = pneg %p2448_p2  ;;  %p2455_p5 = por %p2454_p7, %p2453_p4 }
  0xfb   : > { %p2456_p6 = pnand %p2455_p5, %p2449_p9 }
  0xfd   : > { %2459 = shalt.err (!%p2456_p6)
}
  0xfe   : > { %p3660_p0 = scmp.ne.s32.totalorder %s3632_s10, 0  ;;  %s3661_s27 = scalar_lea.sflag [#allocation11], %s2847_s28 }
  0xff   : > { %s2057_s7 = smul.u32 192, %s2688_s21  ;;  %s484_s5 = scalar_lea.vmem [#allocation15], %s2056_s6 }
 0x100   : > { %2098 = dma.hbm_to_vmem [thread:$0]  (!%p3660_p0), %s3125_s2, 256, %s3129_s26, %s3661_s27, %s3657_s1, %s3657_s1, %s3656_s23  }
 0x101   : > { %s493_s18 = sshll.u32 %s484_s5, 4  ;;  %s3662_s16 = sld [smem:[#allocation48_spill]]  ;;  %s3168_s18 = int_to_ptr.vmem [resolvable:$true] %s493_s18 }
 0x107   : > { %s3663_s12 = smov %s3662_s16  ;;  %s3166_s15 = scalar_lea.hbm %s3662_s16, %s2057_s7 }
 0x108   : > { %s2460_s20 = scalar_lea.hbm %s3166_s15, 192  ;;  %s2465_s19 = scalar_lea.hbm %s3663_s12, 768 }
 0x109   : > { %p2461_p10 = scmp.ne.s32.totalorder %s3166_s15, %s2460_s20  ;;  %p2466_p1 = scmp.lt.u32.totalorder %s3166_s15, %s3663_s12 }
 0x10a   : > { %p2467_p13 = scmp.lt.u32.totalorder %s2465_s19, %s2460_s20  ;;  %p2469_p2 = scmp.lt.u32.totalorder %s2460_s20, %s3166_s15 }
 0x10b   : > { %p2463_p11 = pnand %p2461_p10, %p3659_p8 }
 0x10c   : > { %p2468_p12 = por %p2467_p13, %p2466_p1 }
 0x10d   : > { %p2464_p3 = pneg %p2463_p11 }
 0x10e   : > { %p2470_p9 = por %p2469_p2, %p2468_p12 }
 0x110   : > { %p2471_p4 = pnand %p2470_p9, %p2464_p3 }
 0x112   : > { %2474 = shalt.err (!%p2471_p4)
}
 0x113   : > { %s2475_s22 = scalar_lea.vmem %s3168_s18, 192  ;;  %s2707_s13 = smov [#allocation15]  }
 0x114   : > { %p2476_p7 = scmp.ne.s32.totalorder %s3168_s18, %s2475_s22  ;;  %s2480_s16 = sshll.u32 %s2707_s13, 4  ;;  %s2481_s16 = int_to_ptr.vmem [resolvable:$false] %s2480_s16 }
 0x115   : > { %s2482_s2 = scalar_lea.vmem %s2481_s16, 384  ;;  %p2483_p10 = scmp.lt.s32.totalorder %s3168_s18, %s2481_s16 }
 0x116   : > { %p2478_p5 = pnand %p2476_p7, %p3659_p8  ;;  %p2484_p11 = scmp.lt.s32.totalorder %s2482_s2, %s2475_s22 }
 0x118   : > { %p2479_p6 = pneg %p2478_p5  ;;  %p2485_p1 = por %p2484_p11, %p2483_p10 }
 0x11a   : > { %p2486_p13 = pnand %p2485_p1, %p2479_p6 }
 0x11c   : > { %2489 = shalt.err (!%p2486_p13)
}
 0x11d   : > { %s3664_s20 = scalar_lea.sflag [#allocation14], %s2847_s28  ;;  %s3665_s27 = sld [smem:[#allocation50_spill]] }
 0x11e   : > { %2104 = dma.hbm_to_vmem [thread:$0]  (!%p3660_p0), %s3166_s15, 192, %s3168_s18, %s3664_s20, %s3657_s1, %s3657_s1, %s3656_s23  }
 0x11f   : > { %s526_s22 = scalar_lea.vmem [#allocation18], %s2056_s6  ;;  %s1805_s16 = sshll.u32 %s2894_s11, 6 }
 0x120   : > { %s535_s13 = sshll.u32 %s526_s22, 4  ;;  %s3205_s13 = int_to_ptr.vmem [resolvable:$true] %s535_s13 }
 0x123   : > { %s3201_s5 = scalar_lea.hbm %s3665_s27, %s2057_s7  ;;  %s2495_s7 = scalar_lea.hbm %s3665_s27, 768 }
 0x124   : > { %s2490_s2 = scalar_lea.hbm %s3201_s5, 192  ;;  %p2496_p9 = scmp.lt.u32.totalorder %s3201_s5, %s3665_s27 }
 0x125   : > { %p2491_p3 = scmp.ne.s32.totalorder %s3201_s5, %s2490_s2  ;;  %p2497_p4 = scmp.lt.u32.totalorder %s2495_s7, %s2490_s2 }
 0x126   : > { %p2499_p5 = scmp.lt.u32.totalorder %s2490_s2, %s3201_s5 }
 0x127   : > { %p2493_p12 = pnand %p2491_p3, %p3659_p8  ;;  %p2498_p7 = por %p2497_p4, %p2496_p9 }
 0x129   : > { %p2494_p2 = pneg %p2493_p12  ;;  %p2500_p6 = por %p2499_p5, %p2498_p7 }
 0x12b   : > { %p2501_p10 = pnand %p2500_p6, %p2494_p2 }
 0x12d   : > { %2504 = shalt.err (!%p2501_p10)
}
 0x12e   : > { %s2505_s6 = scalar_lea.vmem %s3205_s13, 192  ;;  %s2708_s19 = smov [#allocation18]  }
 0x12f   : > { %p2506_p11 = scmp.ne.s32.totalorder %s3205_s13, %s2505_s6  ;;  %s2510_s22 = sshll.u32 %s2708_s19, 4  ;;  %s2511_s22 = int_to_ptr.vmem [resolvable:$false] %s2510_s22 }
 0x130   : > { %s2512_s18 = scalar_lea.vmem %s2511_s22, 384  ;;  %p2513_p3 = scmp.lt.s32.totalorder %s3205_s13, %s2511_s22 }
 0x131   : > { %p2508_p1 = pnand %p2506_p11, %p3659_p8  ;;  %p2514_p12 = scmp.lt.s32.totalorder %s2512_s18, %s2505_s6 }
 0x133   : > { %p2509_p13 = pneg %p2508_p1  ;;  %p2515_p9 = por %p2514_p12, %p2513_p3 }
 0x135   : > { %p2516_p4 = pnand %p2515_p9, %p2509_p13 }
 0x137   : > { %2519 = shalt.err (!%p2516_p4)
}
 0x138   : > { %s3666_s2 = scalar_lea.sflag [#allocation17], %s2847_s28  ;;  %s1881_s15 = sshll.u32 %s2688_s21, 10 }
 0x139   : > { %2110 = dma.hbm_to_vmem [thread:$0]  (!%p3660_p0), %s3201_s5, 192, %s3205_s13, %s3666_s2, %s3657_s1, %s3657_s1, %s3656_s23  }
 0x13a   : > { %s3667_s26 = sld [smem:[#allocation52_spill]]  ;;  %s568_s19 = scalar_lea.vmem [#allocation21], %s1805_s16 }
 0x13b   : > { %s577_s22 = sshll.u32 %s568_s19, 4  ;;  %s3242_s22 = int_to_ptr.vmem [resolvable:$true] %s577_s22 }
 0x140   : > { %s3238_s6 = scalar_lea.hbm %s3667_s26, %s1881_s15  ;;  %s2525_s2 = scalar_lea.hbm %s3667_s26, 4096 }
 0x141   : > { %s2520_s18 = scalar_lea.hbm %s3238_s6, 1024  ;;  %p2526_p6 = scmp.lt.u32.totalorder %s3238_s6, %s3667_s26 }
 0x142   : > { %p2521_p2 = scmp.ne.s32.totalorder %s3238_s6, %s2520_s18  ;;  %p2527_p10 = scmp.lt.u32.totalorder %s2525_s2, %s2520_s18 }
 0x143   : > { %p2529_p1 = scmp.lt.u32.totalorder %s2520_s18, %s3238_s6 }
 0x144   : > { %p2523_p7 = pnand %p2521_p2, %p3659_p8  ;;  %p2528_p11 = por %p2527_p10, %p2526_p6 }
 0x146   : > { %p2524_p5 = pneg %p2523_p7  ;;  %p2530_p13 = por %p2529_p1, %p2528_p11 }
 0x148   : > { %p2531_p3 = pnand %p2530_p13, %p2524_p5 }
 0x14a   : > { %2534 = shalt.err (!%p2531_p3)
}
 0x14b   : > { %s2535_s11 = scalar_lea.vmem %s3242_s22, 1024  ;;  %s2709_s16 = smov [#allocation21]  }
 0x14c   : > { %p2536_p12 = scmp.ne.s32.totalorder %s3242_s22, %s2535_s11  ;;  %s2540_s20 = sshll.u32 %s2709_s16, 4  ;;  %s2541_s20 = int_to_ptr.vmem [resolvable:$false] %s2540_s20 }
 0x14d   : > { %s2542_s19 = scalar_lea.vmem %s2541_s20, 2048  ;;  %p2543_p2 = scmp.lt.s32.totalorder %s3242_s22, %s2541_s20 }
 0x14e   : > { %p2538_p9 = pnand %p2536_p12, %p3659_p8  ;;  %p2544_p7 = scmp.lt.s32.totalorder %s2542_s19, %s2535_s11 }
 0x150   : > { %p2539_p4 = pneg %p2538_p9  ;;  %p2545_p6 = por %p2544_p7, %p2543_p2 }
 0x152   : > { %p2546_p10 = pnand %p2545_p6, %p2539_p4 }
 0x154   : > { %2549 = shalt.err (!%p2546_p10)
}
 0x155   : > { %s3668_s18 = scalar_lea.sflag [#allocation20], %s2847_s28  ;;  %p3669_p8 = scmp.ne.s32.totalorder %s3651_s3, 0 }
 0x156   : > { %2116 = dma.hbm_to_vmem [thread:$0]  (!%p3660_p0), %s3238_s6, 1024, %s3242_s22, %s3668_s18, %s3657_s1, %s3657_s1, %s3656_s23  }
 0x157   : > { %589 = sbr.rel (%p3669_p8) target bundleno = 1869 (0x74d), region = 60  ;;  %s3273_s25 = sand.u32 (!%p3669_p8), 1, %s2672_s17  }
 0x158   : > { %s1809_s5 = sshll.u32 (!%p3669_p8), %s3273_s25, 3  ;;  %s592_s13 = scalar_lea.sflag (!%p3669_p8), [#allocation8], %s3273_s25 }
 0x159   : > { %s3277_s10 = scalar_lea.vmem (!%p3669_p8), [#allocation7], %s1809_s5  ;;  %p3670_p5 = scmp.ne.s32.totalorder (!%p3669_p8), %s3645_s30, 0 }
 0x15e   : > { %2623 = dma.done.wait (%p3670_p5), %s592_s13, 128  }
 0x15f   : > { %2625 = vsyncadd (%p3670_p5), %s592_s13, 4294967168  ;;  %s600_s28 = sand.u32 1, %s3020_s29   ;;  %s1810_s3 = sshll.u32 %s3273_s25, 6 }
 0x160   : > { %s601_s23 = scalar_lea.sflag [#allocation11], %s600_s28  ;;  %s3285_s1 = scalar_lea.vmem [#allocation10], %s1810_s3 }
 0x161   : > { %2627 = dma.done.wait (%p3670_p5), %s601_s23, 1024  }
 0x162   : > { %2629 = vsyncadd (%p3670_p5), %s601_s23, 4294966272  ;;  %s3292_s6 = sand.u32 1, %s2660_s14   ;;  %p3671_p0 = scmp.ne.s32.totalorder %s3646_s24, 0 }
 0x163   : > { %s1811_s22 = sshll.u32 %s3292_s6, 4 }
 0x164   : > { %s613_s2 = scalar_lea.vmem [#allocation12], %s1811_s22 }
 0x165   : > { %2631 = dma.done.wait (%p3671_p0), %s601_s23, 256  }
 0x166   : > { %2633 = vsyncadd (%p3671_p0), %s601_s23, 4294967040  ;;  %s619_s15 = scalar_lea.sflag [#allocation14], %s600_s28  ;;  %s621_s7 = scalar_lea.vmem [#allocation13], %s3292_s6 }
 0x167   : > { %2635 = dma.done.wait (%p3671_p0), %s619_s15, 208  }
 0x168   : > { %2637 = vsyncadd (%p3671_p0), %s619_s15, 4294967088  ;;  %s2060_s30 = smul.u32 12, %s3292_s6  ;;  %s636_s16 = scalar_lea.sflag [#allocation17], %s600_s28 }
 0x169   : > { %s638_s20 = scalar_lea.vmem [#allocation16], %s3292_s6 }
 0x16a   : > { %s630_s11 = scalar_lea.vmem [#allocation15], %s2060_s30 }
 0x16b   : > { %2639 = dma.done.wait (%p3671_p0), %s636_s16, 208  }
 0x16c   : > { %2641 = vsyncadd (%p3671_p0), %s636_s16, 4294967088  ;;  %s3310_s19 = scalar_lea.vmem [#allocation18], %s2060_s30  ;;  %s653_s18 = scalar_lea.sflag [#allocation20], %s600_s28 }
 0x16d   : > { %s655_s5 = scalar_lea.vmem [#allocation19], %s3292_s6 }
 0x16e   : > { %2643 = dma.done.wait (%p3671_p0), %s653_s18, 1040  }
 0x16f   : > { %2645 = vsyncadd (%p3671_p0), %s653_s18, 4294966256  ;;  %s1812_s13 = sshll.u32 %s3292_s6, 6  ;;  %p3672_p11 = scmp.eq.s32.totalorder %s3020_s29, 0 }
 0x170   : > { %s3318_s3 = scalar_lea.vmem [#allocation21], %s1812_s13 }
 0x171   : > { %2647 = dma.done.wait (%p3672_p11), [#allocation23], 16   ;;  %p3673_p1 = pmov %p3672_p11 }
 0x172   : > { %s3674_s23 = sld [smem:[#allocation36_spill]]  ;;  %s1814_s28 = sshll.u32 %s3273_s25, 4  ;;  %v2221_v0 = vld [vmem:[%s613_s2] sm:$0xff]   ;;  %v2222_v1 = vld [vmem:[%s613_s2 + $0x8] sm:$0xff]   ;;  %vm958_vm0 = vcmask 1043456   ;;  %vm933_vm1 = vcmask 195584  }
 0x173   : > { %2649 = vsyncadd (%p3673_p1), [#allocation23], 4294967280  ;;  %v2223_v2 = vld [vmem:[%s630_s11] sm:$0xff]   ;;  %v2224_v3 = vld [vmem:[%s630_s11 + $0x8] ss:$0 sps:$4 sm:$0xff]   ;;  %vm849_vm2 = vcmask 261120  }
 0x174   : > { %2049 = vmatprep.subr.bf16.mxu1 %v2223_v2  ;;  %v2225_v4 = vld [vmem:[%s3285_s1 + $0x20] sm:$0xff]   ;;  %1941 = vmatprep.subr.bf16.mxu0 %v2223_v2  ;;  %v960_v5 = vsel %vm958_vm0, %v2224_v3, 0  ;;  %v2226_v7 = vld [vmem:[%s3285_s1 + $0x28] sm:$0xff]   ;;  %v2228_v8 = vld [vmem:[%s3285_s1 + $0x30] sm:$0xff]   ;;  %s3419_s30 = scalar_lea.vmem [#allocation24], %s1814_s28 }
 0x175   : > { %2051 = vmatpush3.bf16.msra.mxu1 %v2223_v2  ;;  %1942 = vmatpush3.bf16.msra.mxu0 %v2223_v2  ;;  %v2227_v6 = vld [vmem:[%s3310_s19] sm:$0xff]   ;;  %v2230_v9 = vld [vmem:[%s3310_s19 + $0x8] ss:$0 sps:$4 sm:$0xff]  }
 0x176   : > { %2054 = vmatprep.subr.msk.bf16.mxu1 %vm958_vm0, %v2224_v3  ;;  %1953 = vmatprep.mubr.msk.bf16.mxu1 %vm933_vm1, %v2225_v4  ;;  %v2231_v10 = vld [vmem:[%s3285_s1] sm:$0xff]   ;;  %v2232_v11 = vld [vmem:[%s3285_s1 + $0x8] sm:$0xff]   ;;  %v1079_v12 = vsel %vm958_vm0, %v2230_v9, 0  ;;  %v2233_v13 = vld [vmem:[%s3285_s1 + $0x10] sm:$0xff]  }
 0x177   : > { %2053 = vmatprep.subr.msk.bf16.mxu0 %vm958_vm0, %v2224_v3  ;;  %1945 = vmatprep.mubr.msk.bf16.mxu0 %vm933_vm1, %v2231_v10  ;;  %v2229_v14 = vld [vmem:[%s3285_s1 + $0x38] sm:$0xff]   ;;  %v2237_v18 = vld [vmem:[%s3318_s3 + $0x10] sm:$0xff]   ;;  %v2238_v19 = vld [vmem:[%s3318_s3 + $0x18] sm:$0xff]  }
 0x178   : > { %s1882_s22 = sshll.u32 %s3674_s23, 4  ;;  %v2234_v15 = vld [vmem:[%s3285_s1 + $0x18] sm:$0xff]   ;;  %s3365_s29 = sshll.u32 %s3674_s23, 6  ;;  %v2241_v22 = vld [vmem:[%s3318_s3 + $0x30] sm:$0xff]   ;;  %v2242_v23 = vld [vmem:[%s3318_s3 + $0x38] sm:$0xff]  }
 0x179   : > { %s3326_s24 = scalar_lea.vmem [#allocation4], %s1882_s22  ;;  %2052 = vmatpush3.bf16.msra.mxu1 %v960_v5  ;;  %1944 = vmatpush3.bf16.msra.mxu0 %v960_v5  ;;  %v2235_v16 = vld [vmem:[%s3318_s3] sm:$0xff]   ;;  %v2236_v17 = vld [vmem:[%s3318_s3 + $0x8] sm:$0xff]   ;;  %s3373_s1 = scalar_lea.vmem [#allocation5], %s3365_s29 }
 0x17a   : > { %780 = vst [vmem:[%s3326_s24] sm:$0xff] %v2221_v0  ;;  %781 = vst [vmem:[%s3326_s24 + $0x8] sm:$0xff] %v2222_v1  ;;  %1961 = vmatprep.subr.bf16.mxu1 %v2227_v6  ;;  %v2239_v20 = vld [vmem:[%s3318_s3 + $0x20] sm:$0xff]   ;;  %v2240_v21 = vld [vmem:[%s3318_s3 + $0x28] sm:$0xff]   ;;  %s3394_s2 = scalar_lea.vmem [#allocation2], %s3365_s29  ;;  %s3407_s15 = scalar_lea.vmem [#allocation3], %s3365_s29 }
 0x17b   : > { %850 = vst.msk [vmem:[%s3373_s1] sm:$0xff] %vm849_vm2, %v2235_v16  ;;  %851 = vst.msk [vmem:[%s3373_s1 + $0x8] sm:$0xff] %vm849_vm2, %v2236_v17  ;;  %v1829_v24 = vld [vmem:[%s638_s20] ss:$0 sm:$0xff]  ;;  %p1861_p13 = scmp.ne.s32.totalorder %s3674_s23, 0 }
 0x17c   : > { %1954 = vmatmul.mubr.msk.bf16.vlgmr.msra.gmra.mrb[0].mxu1 %vm933_vm1, %v2226_v7  ;;  %1946 = vmatmul.mubr.msk.bf16.vlgmr.msra.gmra.mrb[0].mxu0 %vm933_vm1, %v2232_v11  ;;  %852 = vst.msk [vmem:[%s3373_s1 + $0x10] sm:$0xff] %vm849_vm2, %v2237_v18  ;;  %853 = vst.msk [vmem:[%s3373_s1 + $0x18] sm:$0xff] %vm849_vm2, %v2238_v19  ;;  %v1848_v1 = vld [vmem:[%s655_s5] ss:$0 sm:$0xff] }
 0x17d   : > { %1962 = vmatpush3.bf16.msra.mxu1 %v2227_v6  ;;  %1957 = vmatprep.mubr.msk.bf16.mxu1 %vm933_vm1, %v2228_v8  ;;  %854 = vst.msk [vmem:[%s3373_s1 + $0x20] sm:$0xff] %vm849_vm2, %v2239_v20  ;;  %855 = vst.msk [vmem:[%s3373_s1 + $0x28] sm:$0xff] %vm849_vm2, %v2240_v21 }
 0x17e   : > { %2055 = vmatprep.subr.msk.bf16.mxu1 %vm958_vm0, %v2230_v9  ;;  %1949 = vmatprep.mubr.msk.bf16.mxu0 %vm933_vm1, %v2233_v13  ;;  %856 = vst.msk [vmem:[%s3373_s1 + $0x30] sm:$0xff] %vm849_vm2, %v2241_v22  ;;  %857 = vst.msk [vmem:[%s3373_s1 + $0x38] sm:$0xff] %vm849_vm2, %v2242_v23 }
 0x181   : > { %1964 = vmatpush3.bf16.msra.mxu1 %v1079_v12 }
 0x184   : > { %1958 = vmatmul.mubr.msk.bf16.gmra.mrb[4].mxu1 %vm933_vm1, %v2229_v14  ;;  %1950 = vmatmul.mubr.msk.bf16.gmra.mrb[4].mxu0 %vm933_vm1, %v2234_v15 }
 0x185   : > { %1965 = vmatprep.mubr.msk.bf16.mxu1 %vm933_vm1, %v2231_v10 }
 0x18c   : > { %1966 = vmatmul.mubr.msk.bf16.vlgmr.msra.gmra.mrb[8].mxu1 %vm933_vm1, %v2232_v11 }
 0x18d   : > { %1969 = vmatprep.mubr.msk.bf16.mxu1 %vm933_vm1, %v2233_v13 }
 0x194   : > { %1970 = vmatmul.mubr.msk.bf16.gmra.mrb[12].mxu1 %vm933_vm1, %v2234_v15 }
 0x195   : > { %1973 = vmatprep.mubr.msk.bf16.mxu1 %vm933_vm1, %v2225_v4 }
 0x19c   : > { %1974 = vmatmul.mubr.msk.bf16.gmra.mrb[16].mxu1 %vm933_vm1, %v2226_v7 }
 0x19d   : > { %1977 = vmatprep.mubr.msk.bf16.mxu1 %vm933_vm1, %v2228_v8 }
 0x1a4   : > { %1978 = vmatmul.mubr.msk.bf16.gmra.mrb[20].mxu1 %vm933_vm1, %v2229_v14 }
 0x24f   : > { %v1955_v25 = vpop.f32.mrb[0].mxu1  ;;  %v1947_v28 = vpop.f32.mrb[0].mxu0 }
 0x250   : > { %v1028_v26 = vpop.f32.mrb[1].mxu1  ;;  %v1037_v29 = vadd.f32 %v1955_v25, %v1829_v24  ;;  %v1005_v32 = vadd.f32 %v1947_v28, %v1829_v24  ;;  %v996_v33 = vpop.f32.mrb[1].mxu0 }
 0x251   : > { %v1956_v27 = vpop.f32.mrb[2].mxu1  ;;  %v1029_v34 = vadd.f32 %v1829_v24, %v1028_v26  ;;  %v997_v36 = vadd.f32 %v1829_v24, %v996_v33  ;;  %v1948_v37 = vpop.f32.mrb[2].mxu0 }
 0x252   : > { %v1040_v30 = vadd.f32 %v1956_v27, %v1829_v24  ;;  %v1031_v31 = vpop.f32.mrb[3].mxu1  ;;  %v1008_v39 = vadd.f32 %v1948_v37, %v1829_v24  ;;  %v999_v40 = vpop.f32.mrb[3].mxu0 }
 0x253   : > { %v1032_v35 = vadd.f32 %v1829_v24, %v1031_v31  ;;  %v1000_v42 = vadd.f32 %v1829_v24, %v999_v40 }
 0x254   : > { %v1183_v38 = vpack.c.bf16 %v1040_v30, %v1037_v29  ;;  %v1179_v43 = vpack.c.bf16 %v1008_v39, %v1005_v32 }
 0x255   : > { %v1182_v41 = vpack.c.bf16 %v1032_v35, %v1029_v34  ;;  %v1178_v45 = vpack.c.bf16 %v1000_v42, %v997_v36  ;;  %v2710_v42 = vmov (!%p1861_p13), 0.0  }
 0x256   : > { %1193 = vst [vmem:[%s3394_s2 + $0x28] sm:$0xff] %v1183_v38  ;;  %1189 = vst [vmem:[%s3394_s2 + $0x8] sm:$0xff] %v1179_v43 }
 0x257   : > { %1192 = vst [vmem:[%s3394_s2 + $0x20] sm:$0xff] %v1182_v41  ;;  %v1959_v44 = vpop.f32.mrb[4].mxu1  ;;  %1188 = vst [vmem:[%s3394_s2] sm:$0xff] %v1178_v45  ;;  %v1951_v48 = vpop.f32.mrb[4].mxu0 }
 0x258   : > { %v1044_v46 = vpop.f32.mrb[5].mxu1  ;;  %v1053_v49 = vadd.f32 %v1959_v44, %v1829_v24  ;;  %v1021_v52 = vadd.f32 %v1951_v48, %v1829_v24  ;;  %v1012_v53 = vpop.f32.mrb[5].mxu0  ;;  %1219 = vst.msk [vmem:[#allocation6] sm:$0xff] (!%p1861_p13), %vm849_vm2, %v2710_v42  ;;  %1220 = vst.msk [vmem:[#allocation6 + $0x8] sm:$0xff] (!%p1861_p13), %vm849_vm2, %v2710_v42 }
 0x259   : > { %v1960_v47 = vpop.f32.mrb[6].mxu1  ;;  %v1045_v54 = vadd.f32 %v1829_v24, %v1044_v46  ;;  %v1013_v56 = vadd.f32 %v1829_v24, %v1012_v53  ;;  %v1952_v57 = vpop.f32.mrb[6].mxu0 }
 0x25a   : > { %v1056_v50 = vadd.f32 %v1960_v47, %v1829_v24  ;;  %v1047_v51 = vpop.f32.mrb[7].mxu1  ;;  %v1024_v59 = vadd.f32 %v1952_v57, %v1829_v24  ;;  %v1015_v60 = vpop.f32.mrb[7].mxu0 }
 0x25b   : > { %v1048_v55 = vadd.f32 %v1829_v24, %v1047_v51  ;;  %v1016_v62 = vadd.f32 %v1829_v24, %v1015_v60 }
 0x25c   : > { %v1185_v58 = vpack.c.bf16 %v1056_v50, %v1053_v49  ;;  %v1181_v63 = vpack.c.bf16 %v1024_v59, %v1021_v52 }
 0x25d   : > { %v1184_v61 = vpack.c.bf16 %v1048_v55, %v1045_v54  ;;  %v1180_v2 = vpack.c.bf16 %v1016_v62, %v1013_v56 }
 0x25e   : > { %1195 = vst [vmem:[%s3394_s2 + $0x38] sm:$0xff] %v1185_v58  ;;  %1191 = vst [vmem:[%s3394_s2 + $0x18] sm:$0xff] %v1181_v63 }
 0x25f   : > { %1194 = vst [vmem:[%s3394_s2 + $0x30] sm:$0xff] %v1184_v61  ;;  %v1967_v0 = vpop.f32.mrb[8].mxu1  ;;  %1190 = vst [vmem:[%s3394_s2 + $0x10] sm:$0xff] %v1180_v2 }
 0x260   : > { %v1115_v3 = vpop.f32.mrb[9].mxu1  ;;  %v1124_v5 = vadd.f32 %v1967_v0, %v1848_v1 }
 0x261   : > { %v1968_v4 = vpop.f32.mrb[10].mxu1  ;;  %v1116_v8 = vadd.f32 %v1848_v1, %v1115_v3 }
 0x262   : > { %v1127_v6 = vadd.f32 %v1968_v4, %v1848_v1  ;;  %v1118_v7 = vpop.f32.mrb[11].mxu1 }
 0x263   : > { %v1119_v9 = vadd.f32 %v1848_v1, %v1118_v7 }
 0x264   : > { %v1197_v10 = vpack.c.bf16 %v1127_v6, %v1124_v5 }
 0x265   : > { %v1196_v11 = vpack.c.bf16 %v1119_v9, %v1116_v8 }
 0x266   : > { %1207 = vst [vmem:[%s3407_s15 + $0x8] sm:$0xff] %v1197_v10 }
 0x267   : > { %1206 = vst [vmem:[%s3407_s15] sm:$0xff] %v1196_v11  ;;  %v1971_v12 = vpop.f32.mrb[12].mxu1 }
 0x268   : > { %v1131_v13 = vpop.f32.mrb[13].mxu1  ;;  %v1140_v15 = vadd.f32 %v1971_v12, %v1848_v1 }
 0x269   : > { %v1972_v14 = vpop.f32.mrb[14].mxu1  ;;  %v1132_v18 = vadd.f32 %v1848_v1, %v1131_v13 }
 0x26a   : > { %v1143_v16 = vadd.f32 %v1972_v14, %v1848_v1  ;;  %v1134_v17 = vpop.f32.mrb[15].mxu1 }
 0x26b   : > { %v1135_v19 = vadd.f32 %v1848_v1, %v1134_v17 }
 0x26c   : > { %v1199_v20 = vpack.c.bf16 %v1143_v16, %v1140_v15 }
 0x26d   : > { %v1198_v21 = vpack.c.bf16 %v1135_v19, %v1132_v18 }
 0x26e   : > { %1209 = vst [vmem:[%s3407_s15 + $0x18] sm:$0xff] %v1199_v20 }
 0x26f   : > { %1208 = vst [vmem:[%s3407_s15 + $0x10] sm:$0xff] %v1198_v21  ;;  %v1975_v22 = vpop.f32.mrb[16].mxu1 }
 0x270   : > { %v1147_v23 = vpop.f32.mrb[17].mxu1  ;;  %v1156_v25 = vadd.f32 %v1975_v22, %v1848_v1 }
 0x271   : > { %v1976_v24 = vpop.f32.mrb[18].mxu1  ;;  %v1148_v28 = vadd.f32 %v1848_v1, %v1147_v23 }
 0x272   : > { %v1159_v26 = vadd.f32 %v1976_v24, %v1848_v1  ;;  %v1150_v27 = vpop.f32.mrb[19].mxu1 }
 0x273   : > { %v1151_v29 = vadd.f32 %v1848_v1, %v1150_v27 }
 0x274   : > { %v1201_v30 = vpack.c.bf16 %v1159_v26, %v1156_v25 }
 0x275   : > { %v1200_v31 = vpack.c.bf16 %v1151_v29, %v1148_v28 }
 0x276   : > { %1211 = vst [vmem:[%s3407_s15 + $0x28] sm:$0xff] %v1201_v30 }
 0x277   : > { %1210 = vst [vmem:[%s3407_s15 + $0x20] sm:$0xff] %v1200_v31  ;;  %v1979_v32 = vpop.f32.mrb[20].mxu1 }
 0x278   : > { %v1163_v33 = vpop.f32.mrb[21].mxu1  ;;  %v1172_v35 = vadd.f32 %v1979_v32, %v1848_v1 }
 0x279   : > { %v1980_v34 = vpop.f32.mrb[22].mxu1  ;;  %v1164_v38 = vadd.f32 %v1848_v1, %v1163_v33  ;;  %1217 = sbr.rel (%p1861_p13) target bundleno = 640 (0x280), region = 108 }
 0x27a   : > { %v1175_v36 = vadd.f32 %v1980_v34, %v1848_v1  ;;  %v1166_v37 = vpop.f32.mrb[23].mxu1 }
 0x27b   : > { %v1167_v39 = vadd.f32 %v1848_v1, %v1166_v37 }
 0x27c   : > { %v1203_v40 = vpack.c.bf16 %v1175_v36, %v1172_v35 }
 0x27d   : > { %v1202_v41 = vpack.c.bf16 %v1167_v39, %v1164_v38 }
 0x27e   : > { %1213 = vst [vmem:[%s3407_s15 + $0x38] sm:$0xff] %v1203_v40 }
 0x27f   : > { %1212 = vst [vmem:[%s3407_s15 + $0x30] sm:$0xff] %v1202_v41 }
 0x280 PF: > { %v1226_v43 = vld [vmem:[%s3326_s24] sm:$0xff]  ;;  %v2711_v44 = vmov 0.0   ;;  %vm2712_vm3 = vmmov 0   ;;  %v1227_v46 = vld [vmem:[%s3326_s24 + $0x8] sm:$0xff]  ;;  %v2243_v47 = vld [vmem:[%s3277_s10] sm:$0xff]   ;;  %v1348_v63 = vlaneseq  ;;  %s3675_s10 = sld [smem:[#allocation36_spill]] }
 0x281   : > { %1981 = vmatprep.subr.bf16.mxu0 %v2711_v44  ;;  %1985 = vmatprep.mubr.msk.bf16.mxu0 %vm2712_vm3, %v2711_v44  ;;  %v1289_v45 = vld [vmem:[%s3394_s2] sm:$0xff]  ;;  %v1290_v48 = vld [vmem:[%s3394_s2 + $0x8] sm:$0xff]  ;;  %v1291_v49 = vld [vmem:[%s3394_s2 + $0x10] sm:$0xff] }
 0x282   : > { %1982 = vmatpush3.bf16.msra.mxu0 %v1226_v43  ;;  %1989 = vmatprep.subr.bf16.mxu1 %v2711_v44  ;;  %v1292_v50 = vld [vmem:[%s3394_s2 + $0x18] sm:$0xff]  ;;  %v1293_v51 = vld [vmem:[%s3394_s2 + $0x20] sm:$0xff]  ;;  %v1294_v52 = vld [vmem:[%s3394_s2 + $0x28] sm:$0xff]  ;;  %v1349_v0 = vand.u32 127, %v1348_v63 }
 0x283   : > { %1983 = vmatprep.subr.bf16.mxu0 %v2711_v44  ;;  %1990 = vmatpush3.bf16.xpose.msra.mxu1 %v1289_v45  ;;  %v1295_v53 = vld [vmem:[%s3394_s2 + $0x30] sm:$0xff]  ;;  %v1296_v54 = vld [vmem:[%s3394_s2 + $0x38] sm:$0xff]  ;;  %v1864_v55 = vld [vmem:[%s621_s7] ss:$0 sm:$0xff] }
 0x284   : > { %1991 = vmatprep.subr.bf16.mxu1 %v2711_v44  ;;  %2005 = vmatprep.mubr.msk.bf16.mxu1 %vm2712_vm3, %v2711_v44  ;;  %vm1350_vm4 = vcmp.lt.s32.totalorder %v1349_v0, 8  ;;  %v1299_v7 = vld [vmem:[%s3407_s15] sm:$0xff]  ;;  %v1300_v8 = vld [vmem:[%s3407_s15 + $0x8] sm:$0xff]  ;;  %v1301_v9 = vld [vmem:[%s3407_s15 + $0x10] sm:$0xff] }
 0x285   : > { %v1302_v18 = vld [vmem:[%s3407_s15 + $0x18] sm:$0xff]  ;;  %v1303_v19 = vld [vmem:[%s3407_s15 + $0x20] sm:$0xff]  ;;  %v1304_v20 = vld [vmem:[%s3407_s15 + $0x28] sm:$0xff] }
 0x286   : > { %1984 = vmatpush3.bf16.msra.mxu0 %v1227_v46  ;;  %v1305_v21 = vld [vmem:[%s3407_s15 + $0x30] sm:$0xff]  ;;  %v1306_v22 = vld [vmem:[%s3407_s15 + $0x38] sm:$0xff]  ;;  %v1418_v30 = vld [vmem:[%s3373_s1] sm:$0xff]  ;;  %p1871_p3 = scmp.ne.s32.totalorder %s3675_s10, 3 }
 0x287   : > { %2009 = vmatprep.subr.bf16.mxu0 %v2711_v44  ;;  %v1419_v31 = vld [vmem:[%s3373_s1 + $0x8] sm:$0xff]  ;;  %v1420_v32 = vld [vmem:[%s3373_s1 + $0x10] sm:$0xff]  ;;  %v1421_v33 = vld [vmem:[%s3373_s1 + $0x18] sm:$0xff] }
 0x288   : > { %v1422_v34 = vld [vmem:[%s3373_s1 + $0x20] sm:$0xff]  ;;  %v1423_v35 = vld [vmem:[%s3373_s1 + $0x28] sm:$0xff]  ;;  %v1424_v36 = vld [vmem:[%s3373_s1 + $0x30] sm:$0xff] }
 0x289   : > { %1986 = vmatmul.mubr.msk.bf16.vlgmr.msra.gmra.mrb[8].mxu0 %vm849_vm2, %v2243_v47  ;;  %v1425_v37 = vld [vmem:[%s3373_s1 + $0x38] sm:$0xff]  ;;  %v1413_v43 = vld [vmem:[#allocation6] sm:$0xff]  ;;  %v1414_v46 = vld [vmem:[#allocation6 + $0x8] sm:$0xff] }
 0x28a   : > { %2025 = vmatprep.mubr.msk.bf16.mxu0 %vm2712_vm3, %v2711_v44  ;;  %2010 = vmatpush3.bf16.msra.mxu0 %v1299_v7 }
 0x28b   : > { %1992 = vmatpush3.bf16.xpose.msra.mxu1 %v1290_v48  ;;  %2011 = vmatprep.subr.bf16.mxu0 %v2711_v44 }
 0x28c   : > { %1993 = vmatprep.subr.bf16.mxu1 %v2711_v44 }
 0x28e   : > { %2012 = vmatpush3.bf16.msra.mxu0 %v1300_v8 }
 0x28f   : > { %2013 = vmatprep.subr.bf16.mxu0 %v2711_v44 }
 0x292   : > { %2014 = vmatpush3.bf16.msra.mxu0 %v1301_v9 }
 0x293   : > { %1994 = vmatpush3.bf16.xpose.msra.mxu1 %v1291_v49  ;;  %2015 = vmatprep.subr.bf16.mxu0 %v2711_v44 }
 0x294   : > { %1995 = vmatprep.subr.bf16.mxu1 %v2711_v44 }
 0x296   : > { %2016 = vmatpush3.bf16.msra.mxu0 %v1302_v18 }
 0x297   : > { %2017 = vmatprep.subr.bf16.mxu0 %v2711_v44 }
 0x29a   : > { %2018 = vmatpush3.bf16.msra.mxu0 %v1303_v19 }
 0x29b   : > { %1996 = vmatpush3.bf16.xpose.msra.mxu1 %v1292_v50  ;;  %2019 = vmatprep.subr.bf16.mxu0 %v2711_v44 }
 0x29c   : > { %1997 = vmatprep.subr.bf16.mxu1 %v2711_v44 }
 0x29e   : > { %2020 = vmatpush3.bf16.msra.mxu0 %v1304_v20 }
 0x29f   : > { %2021 = vmatprep.subr.bf16.mxu0 %v2711_v44 }
 0x2a2   : > { %2022 = vmatpush3.bf16.msra.mxu0 %v1305_v21 }
 0x2a3   : > { %1998 = vmatpush3.bf16.xpose.msra.mxu1 %v1293_v51  ;;  %2023 = vmatprep.subr.bf16.mxu0 %v2711_v44 }
 0x2a4   : > { %1999 = vmatprep.subr.bf16.mxu1 %v2711_v44 }
 0x2a6   : > { %2024 = vmatpush3.bf16.msra.mxu0 %v1306_v22 }
 0x2a7   : > { %2029 = vmatprep.subr.bf16.mxu0 %v2711_v44 }
 0x2ab   : > { %2000 = vmatpush3.bf16.xpose.msra.mxu1 %v1294_v52  ;;  %v1872_v52 = vld [vmem:[#allocation22] ss:$0 sm:$0xff] (!%p1871_p3) }
 0x2ac   : > { %2001 = vmatprep.subr.bf16.mxu1 %v2711_v44 }
 0x2b3   : > { %2002 = vmatpush3.bf16.xpose.msra.mxu1 %v1295_v53 }
 0x2b4   : > { %2003 = vmatprep.subr.bf16.mxu1 %v2711_v44 }
 0x2bb   : > { %2004 = vmatpush3.bf16.xpose.msra.mxu1 %v1296_v54 }
 0x35c   : > { %v1278_v56 = vpop.f32.mrb[8].mxu0 }
 0x35d   : > { %v1987_v57 = vpop.f32.mrb[9].mxu0  ;;  %v1279_v59 = vadd.f32 %v1864_v55, %v1278_v56 }
 0x35e   : > { %v1281_v58 = vpop.f32.mrb[10].mxu0 }
 0x35f   : > { %v1282_v60 = vadd.f32 %v1864_v55, %v1281_v58  ;;  %v1988_v61 = vpop.f32.mrb[11].mxu0 }
 0x361   : > { %v1285_v62 = vpack.c.bf16 %v1282_v60, %v1279_v59 }
 0x363   : > { %2006 = vmatmul.mubr.bf16.vlgmr.msra.gmra.mrb[24].mxu1 %v1285_v62 }
 0x436   : > { %v1341_v1 = vpop.f32.mrb[24].mxu1 }
 0x437   : > { %v2007_v2 = vpop.f32.mrb[25].mxu1  ;;  %v1351_v3 = vsel %vm1350_vm4, %v1341_v1, -1e+30 }
 0x438   : > { %1353 = vmax.xlane.f32.xlu0 %v1351_v3  ;;  %v1344_v4 = vpop.f32.mrb[26].mxu1 }
 0x439   : > { %v2008_v5 = vpop.f32.mrb[27].mxu1  ;;  %v1352_v6 = vsel %vm1350_vm4, %v1344_v4, -1e+30 }
 0x43c   : > { %1355 = vmax.xlane.f32.xlu0 %v1352_v6 }
 0x4c5   : > { %v1354_v10 = vpop.xlane.xlu0 %1353 }
 0x4c6   : > { %v1357_v11 = vsub.f32 %v1351_v3, %v1354_v10 }
 0x4c8   : > { %v1359_v12 = vmul.f32 1.442695, %v1357_v11 }
 0x4c9   : > { %v1356_v13 = vpop.xlane.xlu0 %1355 }
 0x4ca   : > { %2244 = vpow2.f32 %v1359_v12  ;;  %v1358_v14 = vsub.f32 %v1352_v6, %v1356_v13 }
 0x4cc   : > { %v1361_v15 = vmul.f32 1.442695, %v1358_v14 }
 0x4ce   : > { %2246 = vpow2.f32 %v1361_v15 }
 0x4d4   : > { %v2245_v16 = vpop.eup %2244 }
 0x4d5   : > { %1363 = vadd.xlane.f32.xlu1 %v2245_v16 }
 0x4d8   : > { %v2247_v17 = vpop.eup %2246 }
 0x4d9   : > { %1365 = vadd.xlane.f32.xlu1 %v2247_v17 }
 0x562   : > { %v1364_v23 = vpop.xlane.xlu1 %1363 }
 0x563   : > { %2248 = vrcp.f32 %v1364_v23 }
 0x566   : > { %v1366_v24 = vpop.xlane.xlu1 %1365 }
 0x567   : > { %2250 = vrcp.f32 %v1366_v24 }
 0x56d   : > { %v2249_v25 = vpop.eup %2248 }
 0x56e   : > { %v1369_v27 = vmul.f32 %v2249_v25, %v2245_v16 }
 0x571   : > { %v2251_v26 = vpop.eup %2250 }
 0x572   : > { %v1370_v28 = vmul.f32 %v2251_v26, %v2247_v17 }
 0x574   : > { %v1371_v29 = vpack.c.bf16 %v1370_v28, %v1369_v27 }
 0x576   : > { %2026 = vmatmul.mubr.bf16.vlgmr.msra.gmra.mrb[12].mxu0 %v1371_v29 }
 0x577   : > { %2030 = vmatpush3.bf16.msra.mxu0 %v1418_v30  ;;  %2045 = vmatprep.mubr.msk.bf16.mxu0 %vm2712_vm3, %v2711_v44 }
 0x578   : > { %2031 = vmatprep.subr.bf16.mxu0 %v2711_v44 }
 0x57b   : > { %2032 = vmatpush3.bf16.msra.mxu0 %v1419_v31 }
 0x57c   : > { %2033 = vmatprep.subr.bf16.mxu0 %v2711_v44 }
 0x57f   : > { %2034 = vmatpush3.bf16.msra.mxu0 %v1420_v32 }
 0x580   : > { %2035 = vmatprep.subr.bf16.mxu0 %v2711_v44 }
 0x583   : > { %2036 = vmatpush3.bf16.msra.mxu0 %v1421_v33 }
 0x584   : > { %2037 = vmatprep.subr.bf16.mxu0 %v2711_v44 }
 0x587   : > { %2038 = vmatpush3.bf16.msra.mxu0 %v1422_v34 }
 0x588   : > { %2039 = vmatprep.subr.bf16.mxu0 %v2711_v44 }
 0x58b   : > { %2040 = vmatpush3.bf16.msra.mxu0 %v1423_v35 }
 0x58c   : > { %2041 = vmatprep.subr.bf16.mxu0 %v2711_v44 }
 0x58f   : > { %2042 = vmatpush3.bf16.msra.mxu0 %v1424_v36 }
 0x590   : > { %2043 = vmatprep.subr.bf16.mxu0 %v2711_v44 }
 0x593   : > { %2044 = vmatpush3.bf16.msra.mxu0 %v1425_v37 }
 0x649   : > { %v1406_v38 = vpop.f32.mrb[12].mxu0 }
 0x64a   : > { %v2027_v39 = vpop.f32.mrb[13].mxu0 }
 0x64b   : > { %v1409_v40 = vpop.f32.mrb[14].mxu0 }
 0x64c   : > { %v1415_v41 = vpack.c.bf16 %v1409_v40, %v1406_v38  ;;  %v2028_v42 = vpop.f32.mrb[15].mxu0 }
 0x64e   : > { %2046 = vmatmul.mubr.bf16.vlgmr.msra.gmra.mrb[16].mxu0 %v1415_v41 }
 0x720   : > { %1474 = sbr.rel (%p1871_p3) target bundleno = 1841 (0x731), region = 112 }
 0x721   : > { %v1460_v45 = vpop.f32.mrb[16].mxu0 }
 0x722   : > { %v1467_v47 = vadd.f32 %v1460_v45, %v1413_v43  ;;  %v2047_v48 = vpop.f32.mrb[17].mxu0 }
 0x723   : > { %v1463_v49 = vpop.f32.mrb[18].mxu0 }
 0x724   : > { %1469 = vst.msk [vmem:[#allocation6] sm:$0xff] %vm849_vm2, %v1467_v47  ;;  %v1468_v50 = vadd.f32 %v1463_v49, %v1414_v46  ;;  %v2048_v51 = vpop.f32.mrb[19].mxu0 }
 0x726   : > { %1470 = vst.msk [vmem:[#allocation6 + $0x8] sm:$0xff] %vm849_vm2, %v1468_v50 }
 0x72b   : > { %v1475_v44 = vld [vmem:[#allocation6] sm:$0xff] }
 0x72c   : > { %v1484_v54 = vadd.f32 %v1872_v52, %v1475_v44 }
 0x72d   : > { %v1476_v53 = vld [vmem:[#allocation6 + $0x8] sm:$0xff] }
 0x72e   : > { %v1485_v55 = vadd.f32 %v1872_v52, %v1476_v53  ;;  %1486 = vst.msk [vmem:[%s3419_s30] sm:$0xff] %vm849_vm2, %v1484_v54 }
 0x730   : > { %1487 = vst.msk [vmem:[%s3419_s30 + $0x8] sm:$0xff] %vm849_vm2, %v1485_v55 }
 0x731 PF: > { %s3676_s6 = sld [smem:[#allocation37_spill]]  ;;  %s3677_s20 = sld [smem:[#allocation53_spill]] }
 0x732   : > { %s1504_s18 = sshll.u32 %s3419_s30, 4  ;;  %s1489_s13 = scalar_lea.sflag [#allocation9], %s3273_s25  ;;  %s3502_s18 = int_to_ptr.vmem [resolvable:$true] %s1504_s18 }
 0x733   : > { %s2550_s3 = scalar_lea.vmem %s3502_s18, 256  ;;  %p3679_p9 = scmp.ne.s32.totalorder %s3648_s8, 0 }
 0x734   : > { %p2551_p12 = scmp.ne.s32.totalorder %s3502_s18, %s2550_s3  ;;  %s2713_s23 = smov [#allocation24]  }
 0x735   : > { %s2554_s28 = sshll.u32 %s2713_s23, 4  ;;  %s2555_s28 = int_to_ptr.vmem [resolvable:$false] %s2554_s28 }
 0x736   : > { %p2552_p4 = pnand %p2551_p12, %p3679_p9  ;;  %s2556_s22 = scalar_lea.vmem %s2555_s28, 512 }
 0x737   : > { %s1890_s7 = sshll.u32 %s3676_s6, 8  ;;  %s3678_s5 = smov %s3677_s20 }
 0x738   : > { %s3499_s19 = scalar_lea.hbm %s3677_s20, %s1890_s7  ;;  %p2553_p2 = pneg %p2552_p4 }
 0x739   : > { %p2557_p7 = scmp.lt.s32.totalorder %s3502_s18, %s2555_s28  ;;  %p2558_p6 = scmp.lt.s32.totalorder %s2556_s22, %s2550_s3 }
 0x73b   : > { %p2559_p10 = por %p2558_p6, %p2557_p7 }
 0x73d   : > { %p2560_p8 = pnand %p2559_p10, %p2553_p2 }
 0x73f   : > { %2563 = shalt.err (!%p2560_p8)
}
 0x740   : > { %s2564_s24 = scalar_lea.hbm %s3499_s19, 256  ;;  %s2568_s2 = scalar_lea.hbm %s3678_s5, 512 }
 0x741   : > { %p2565_p5 = scmp.ne.s32.totalorder %s3499_s19, %s2564_s24  ;;  %p2569_p1 = scmp.lt.u32.totalorder %s3499_s19, %s3678_s5 }
 0x742   : > { %p2570_p13 = scmp.lt.u32.totalorder %s2568_s2, %s2564_s24  ;;  %p2572_p12 = scmp.lt.u32.totalorder %s2564_s24, %s3499_s19 }
 0x743   : > { %p2566_p0 = pnand %p2565_p5, %p3679_p9 }
 0x744   : > { %p2571_p3 = por %p2570_p13, %p2569_p1 }
 0x745   : > { %p2567_p11 = pneg %p2566_p0 }
 0x746   : > { %p2573_p4 = por %p2572_p12, %p2571_p3 }
 0x748   : > { %p2574_p2 = pnand %p2573_p4, %p2567_p11 }
 0x74a   : > { %2577 = shalt.err (!%p2574_p2)
}
 0x74b   : > { %s2714_s10 = smov 128   ;;  %s2715_s6 = smov 8  }
 0x74c   : > { %2083 = dma.vmem_to_hbm [thread:$0]  (%p3679_p9), %s3502_s18, 256, %s3499_s19, %s1489_s13, %s2714_s10, %s2714_s10, %s2715_s6  }
 0x74d PF: > { %s3680_s7 = sld [smem:[#allocation39_spill]]  ;;  %s3681_s11 = sld [smem:[#allocation34_spill]] }
 0x74e   : > { %s3682_s16 = sld [smem:[#allocation44_spill]] }
 0x753   : > { %p2124_p7 = scmp.ge.s32.totalorder %s3680_s7, 2  ;;  %s1519_s20 = sand.u32 1, %s3681_s11  }
 0x754   : > { %p3683_p6 = scmp.ne.s32.totalorder %s3682_s16, 0  ;;  %s1520_s3 = scalar_lea.sflag [#allocation9], %s1519_s20 }
 0x756   : > { %p2118_p10 = pnand %p2124_p7, %p3683_p6 }
 0x758   : > { %2651 = dma.done.wait (!%p2118_p10), %s1520_s3, 256  }
 0x759   : > { %2653 = vsyncadd (!%p2118_p10), %s1520_s3, 4294967040  ;;  %s39_s23 = sadd.s32 1, %s3680_s7   ;;  %s3684_s28 = sld [smem:[#allocation33_spill]] }
 0x75a   : > { %p36_p8 = scmp.ge.s32.totalorder %s39_s23, 10   ;;  %s3685_s15 = sld [smem:[#allocation42_spill]] }
 0x75b   : > { %s3686_s8 = sld [smem:[#allocation35_spill]]  ;;  %s3687_s18 = sld [smem:[#allocation43_spill]] }
 0x75c   : > { %s3688_s20 = sld [smem:[#allocation38_spill]]  ;;  %s3689_s25 = sld [smem:[#allocation40_spill]] }
 0x75d   : > { %s3690_s22 = sld [smem:[#allocation41_spill]]  ;;  %s3691_s13 = smov %s2660_s14 }
 0x75e   : > { %s3693_s16 = smov %s2672_s17  ;;  %s3695_s19 = smov %s2688_s21 }
 0x75f   : > { %s3692_s14 = smov %s3684_s28  ;;  %38 = sbr.rel (!%p36_p8) target bundleno = 28 (0x1c), region = 225 }
 0x761   : > { %s3694_s17 = smov %s3686_s8 }
 0x762   : > { %s3696_s21 = smov %s3689_s25 }
 0x766   :  { %1525 = vsyncpa [#allocation8], 1 }
 0x767   :  { %1527 = vsyncpa [#allocation8 + $0x1], 1 }
 0x768   :  { %1528 = vsyncpa [#allocation11], 1 }
 0x769   :  { %1530 = vsyncpa [#allocation11 + $0x1], 1 }
 0x76a   :  { %1531 = vsyncpa [#allocation14], 1 }
 0x76b   :  { %1533 = vsyncpa [#allocation14 + $0x1], 1 }
 0x76c   :  { %1534 = vsyncpa [#allocation17], 1 }
 0x76d   :  { %1536 = vsyncpa [#allocation17 + $0x1], 1 }
 0x76e   :  { %1537 = vsyncpa [#allocation20], 1 }
 0x76f   :  { %1539 = vsyncpa [#allocation20 + $0x1], 1 }
 0x770   :  { %1540 = vsyncpa [#allocation23], 1 }
 0x771   :  { %1541 = vsyncpa [#allocation9], 1 }
 0x772   :  { %1543 = vsyncpa [#allocation9 + $0x1], 1 }

</bundles_post_ra>
